<compile_context>
chip_gen: v6e
topology: v6e:2x2x1
jax: 0.10.0
libtpu: 0.0.40
codegen_flags: <defaults>
</compile_context>

<pallas_src>
import functools

import jax
import jax.numpy as jnp
from jax.experimental import pallas as pl
from jax.experimental.pallas import tpu as pltpu


# ----------------------------- kernel ---------------------------------------


def _layernorm(x, gamma, beta, eps):
    # matches torch: std(unbiased=False), y = (x - mu) / (sigma + eps) * g + b
    mu = jnp.mean(x, axis=-1, keepdims=True)
    sigma = jnp.sqrt(jnp.mean((x - mu) ** 2, axis=-1, keepdims=True))
    return (x - mu) / (sigma + eps) * gamma + beta


def encoder_kernel(x_ref, rep_ref, col_ref, qmask_ref, vmask_ref, bias_ref,
                   wqkv_ref, bqkv_ref, wo_ref, bo_ref,
                   g1_ref, be1_ref, w1_ref, b1_ref, w2_ref, b2_ref,
                   g2_ref, be2_ref, out_ref, *, num_layers, eps):
    x = x_ref[...]              # (R, M)   R = N*K   (batch folded into rows)
    rep = rep_ref[...]          # (G, R)   constant 0/1 row-replication, G = N*H*K
    col = col_ref[...]          # (R, G)   constant 0/1 head-collapse (rep^T)
    qmask = qmask_ref[...]      # (G, M)   per-head column mask * 1/sqrt(d_head)
    vmask = vmask_ref[...]      # (G, M)   per-head column mask
    bias = bias_ref[...]        # (G, G)   0 on same-(batch,head) block, -1e9 off

    emb = x.shape[1]

    # L is tiny (2); static unroll is fine per review.  Switch to a layer grid
    # axis / fori_loop at realistic depths.
    for l in range(num_layers):
        # ---- replicate rows once per head via constant matmul (MXU is idle)
        x_rep = jnp.dot(rep, x, preferred_element_type=jnp.float32)        # (G, M)

        # ---- fused multi-head Q/K/V projection: one matmul + one bias add
        qkv = jnp.dot(x_rep, wqkv_ref[l],
                      preferred_element_type=jnp.float32) + bqkv_ref[l]    # (G, 3M)
        q = qkv[:, :emb] * qmask                 # head-h columns only, pre-scaled
        k = qkv[:, emb:2 * emb]
        v = qkv[:, 2 * emb:] * vmask             # head-h columns only

        # ---- block-diagonal attention: one scores matmul, one softmax, one P@V
        s = jax.lax.dot_general(q, k, (((1,), (1,)), ((), ())),
                                preferred_element_type=jnp.float32) + bias  # (G, G)
        s = s - jnp.max(s, axis=-1, keepdims=True)
        e = jnp.exp(s)
        p = e / jnp.sum(e, axis=-1, keepdims=True)   # exact divide (parity w/ torch)
        o = jnp.dot(p, v, preferred_element_type=jnp.float32)               # (G, M)

        # ---- collapse the H row blocks -> "concat heads" layout, then project
        heads = jnp.dot(col, o, preferred_element_type=jnp.float32)         # (R, M)
        attn = jnp.dot(heads, wo_ref[l],
                       preferred_element_type=jnp.float32) + bo_ref[l]      # (R, M)

        # ---- residual + layernorm 1 (dropout = identity in eval)
        out1 = _layernorm(x + attn, g1_ref[l], be1_ref[l], eps)

        # ---- feed forward: linear - relu - linear
        h1 = jnp.dot(out1, w1_ref[l],
                     preferred_element_type=jnp.float32) + b1_ref[l]
        h1 = jnp.maximum(h1, 0.0)
        ff = jnp.dot(h1, w2_ref[l],
                     preferred_element_type=jnp.float32) + b2_ref[l]

        # ---- residual + layernorm 2 (dropout = identity in eval)
        x = _layernorm(out1 + ff, g2_ref[l], be2_ref[l], eps)

    out_ref[...] = x.astype(out_ref.dtype)


# ----------------------------- wrapper ---------------------------------------


def _full_spec(shape):
    zeros = (0,) * len(shape)
    return pl.BlockSpec(shape, lambda i, _z=zeros: _z)


def encoder_apply(x, p, num_heads, eps=1e-10):
    N, K, M = x.shape
    L = p["wqkv"].shape[0]
    F_dim = p["w1"].shape[2]
    H = num_heads
    dh = M // H
    R = N * K            # folded batch rows
    G = N * H * K        # per-(batch, head) packed rows

    x2 = x.reshape(R, M)

    # ---- constant packing matrices / masks (built once in the wrapper) ------
    g_ids = jnp.arange(G)
    n_of = g_ids // (H * K)
    h_of = (g_ids // K) % H
    k_of = g_ids % K
    src_row = n_of * K + k_of                                    # source row in x2
    rep = (src_row[:, None] == jnp.arange(R)[None, :]).astype(jnp.float32)   # (G, R)
    col = rep.T                                                               # (R, G)
    head_of_col = jnp.arange(M) // dh
    vmask = (h_of[:, None] == head_of_col[None, :]).astype(jnp.float32)       # (G, M)
    qmask = vmask / jnp.sqrt(jnp.float32(dh))    # fold 1/sqrt(dim_q) into Q mask
    blk = g_ids // K                             # (batch, head) block id
    bias = jnp.where(blk[:, None] == blk[None, :], 0.0, -1e9).astype(jnp.float32)

    flops_layer = (2 * G * R * M            # head replication (constant matmul)
                   + 2 * G * M * 3 * M      # fused QKV projection
                   + 2 * G * M * G          # scores
                   + 2 * G * G * M          # P @ V
                   + 2 * R * G * M          # head collapse (constant matmul)
                   + 2 * R * M * M          # output projection
                   + 4 * R * M * F_dim)     # feed-forward
    cost = pl.CostEstimate(
        flops=L * flops_layer,
        transcendentals=L * G * G,
        bytes_accessed=2 * R * M * 4
        + (G * R + R * G + 2 * G * M + G * G) * 4
        + sum(int(v.size) for v in p.values()) * 4,
    )

    kernel = functools.partial(encoder_kernel, num_layers=L, eps=eps)
    out2 = pl.pallas_call(
        kernel,
        out_shape=jax.ShapeDtypeStruct((R, M), jnp.float32),
        grid=(1,),                                   # single step: no per-step overhead
        in_specs=[
            _full_spec((R, M)),                      # x (batch folded)
            _full_spec((G, R)), _full_spec((R, G)),  # rep, collapse constants
            _full_spec((G, M)), _full_spec((G, M)),  # q/v head masks
            _full_spec((G, G)),                      # block-diagonal score bias
            _full_spec((L, M, 3 * M)), _full_spec((L, 1, 3 * M)),   # Wqkv, bqkv
            _full_spec((L, M, M)), _full_spec((L, 1, M)),           # Wo, bo
            _full_spec((L, 1, M)), _full_spec((L, 1, M)),           # gamma1, beta1
            _full_spec((L, M, F_dim)), _full_spec((L, 1, F_dim)),   # W1, b1
            _full_spec((L, F_dim, M)), _full_spec((L, 1, M)),       # W2, b2
            _full_spec((L, 1, M)), _full_spec((L, 1, M)),           # gamma2, beta2
        ],
        out_specs=_full_spec((R, M)),
        compiler_params=pltpu.CompilerParams(dimension_semantics=("arbitrary",)),
        cost_estimate=cost,
    )(x2, rep, col, qmask, vmask, bias,
      p["wqkv"], p["bqkv"], p["wo"], p["bo"], p["g1"], p["be1"],
      p["w1"], p["b1"], p["w2"], p["b2"], p["g2"], p["be2"])
    return out2.reshape(N, K, M)


# ------------------------- deterministic params ------------------------------


def init_encoder_params(key, num_heads, emb_dim, ff_dim, num_layers):
    M = emb_dim
    Dh = M // num_heads
    c_qk = (6.0 / (M + Dh)) ** 0.5
    c_o = (6.0 / (M + Dh * num_heads)) ** 0.5
    c_ff = (6.0 / (M + ff_dim)) ** 0.5
    b_in = 1.0 / (M ** 0.5)

    def u(k, shape, c):
        return jax.random.uniform(k, shape, jnp.float32, -c, c)

    wqkv, bqkv, wo, bo, w1, b1, w2, b2 = ([] for _ in range(8))
    for _ in range(num_layers):
        keys = jax.random.split(key, 9)
        key = keys[0]
        # packed projection columns: [Q_h0..Q_h{H-1} | K_h0.. | V_h0..]
        wqkv.append(u(keys[1], (M, 3 * M), c_qk))
        bqkv.append(u(keys[2], (1, 3 * M), b_in))
        wo.append(u(keys[3], (M, M), c_o))
        bo.append(u(keys[4], (1, M), b_in))
        w1.append(u(keys[5], (M, ff_dim), c_ff))
        b1.append(u(keys[6], (1, ff_dim), b_in))
        w2.append(u(keys[7], (ff_dim, M), c_ff))
        b2.append(u(keys[8], (1, M), 1.0 / (ff_dim ** 0.5)))

    L = num_layers
    return {
        "wqkv": jnp.stack(wqkv), "bqkv": jnp.stack(bqkv),
        "wo": jnp.stack(wo), "bo": jnp.stack(bo),
        "g1": jnp.ones((L, 1, M), jnp.float32),
        "be1": jnp.zeros((L, 1, M), jnp.float32),
        "w1": jnp.stack(w1), "b1": jnp.stack(b1),
        "w2": jnp.stack(w2), "b2": jnp.stack(b2),
        "g2": jnp.ones((L, 1, M), jnp.float32),
        "be2": jnp.zeros((L, 1, M), jnp.float32),
    }


# --------------------------- pure-JAX reference -------------------------------


def encoder_ref(x, p, num_heads, eps=1e-10):
    L = p["wqkv"].shape[0]
    N, K, M = x.shape
    Dh = M // num_heads

    def ln(z, g, b):
        mu = z.mean(-1, keepdims=True)
        sig = jnp.sqrt(((z - mu) ** 2).mean(-1, keepdims=True))
        return (z - mu) / (sig + eps) * g + b

    for l in range(L):
        qkv = x @ p["wqkv"][l] + p["bqkv"][l]
        q, k, v = qkv[..., :M], qkv[..., M:2 * M], qkv[..., 2 * M:]
        heads = []
        for h in range(num_heads):
            sl = slice(h * Dh, (h + 1) * Dh)
            s = jnp.einsum("nkd,nld->nkl", q[..., sl], k[..., sl])
            s = s / jnp.sqrt(jnp.float32(Dh))
            w = jax.nn.softmax(s, axis=-1)
            heads.append(jnp.einsum("nkl,nld->nkd", w, v[..., sl]))
        attn = jnp.concatenate(heads, -1) @ p["wo"][l] + p["bo"][l]
        out1 = ln(x + attn, p["g1"][l], p["be1"][l])
        ff = jnp.maximum(out1 @ p["w1"][l] + p["b1"][l], 0.0) @ p["w2"][l] + p["b2"][l]
        x = ln(out1 + ff, p["g2"][l], p["be2"][l])
    return x


# --------------------------------- main ---------------------------------------

if __name__ == "__main__":
    N, K, M = 2, 8, 32          # batch, seq_len, emb_dim
    num_heads, ff_dim, num_layers = 4, 64, 2

    key = jax.random.PRNGKey(0)
    kx, kp = jax.random.split(key)
    src_seq = jax.random.normal(kx, (N, K, M), jnp.float32)
    params = init_encoder_params(kp, num_heads, M, ff_dim, num_layers)

    out = jax.block_until_ready(encoder_apply(src_seq, params, num_heads))
    ref = encoder_ref(src_seq, params, num_heads)

    assert out.shape == (N, K, M)
    max_err = float(jnp.max(jnp.abs(out - ref)))
    assert bool(jnp.allclose(out, ref, atol=1e-4, rtol=1e-4)), max_err

    print("KERNEL_OK")
</pallas_src>

<mosaic_0001>
module attributes {stable_mosaic.version = 11 : i64} {
  func.func @encoder_kernel(%arg0: i32, %arg1: memref<16x32xf32, #tpu.memory_space<vmem>>, %arg2: memref<64x16xf32, #tpu.memory_space<vmem>>, %arg3: memref<16x64xf32, #tpu.memory_space<vmem>>, %arg4: memref<64x32xf32, #tpu.memory_space<vmem>>, %arg5: memref<64x32xf32, #tpu.memory_space<vmem>>, %arg6: memref<64x64xf32, #tpu.memory_space<vmem>>, %arg7: memref<2x32x96xf32, #tpu.memory_space<vmem>>, %arg8: memref<2x1x96xf32, #tpu.memory_space<vmem>>, %arg9: memref<2x32x32xf32, #tpu.memory_space<vmem>>, %arg10: memref<2x1x32xf32, #tpu.memory_space<vmem>>, %arg11: memref<2x1x32xf32, #tpu.memory_space<vmem>>, %arg12: memref<2x1x32xf32, #tpu.memory_space<vmem>>, %arg13: memref<2x32x64xf32, #tpu.memory_space<vmem>>, %arg14: memref<2x1x64xf32, #tpu.memory_space<vmem>>, %arg15: memref<2x64x32xf32, #tpu.memory_space<vmem>>, %arg16: memref<2x1x32xf32, #tpu.memory_space<vmem>>, %arg17: memref<2x1x32xf32, #tpu.memory_space<vmem>>, %arg18: memref<2x1x32xf32, #tpu.memory_space<vmem>>, %arg19: memref<16x32xf32, #tpu.memory_space<vmem>>) attributes {dimension_semantics = [#tpu.dimension_semantics<arbitrary>], iteration_bounds = array<i64: 1>, scalar_prefetch = 0 : i64, scratch_operands = 0 : i64, tpu.core_type = #tpu.core_type<tc>, window_params = [{pipeline_mode = #tpu.pipeline_mode<synchronous>, transform_indices = @transform_0, window_bounds = array<i64: 16, 32>}, {pipeline_mode = #tpu.pipeline_mode<synchronous>, transform_indices = @transform_1, window_bounds = array<i64: 64, 16>}, {pipeline_mode = #tpu.pipeline_mode<synchronous>, transform_indices = @transform_2, window_bounds = array<i64: 16, 64>}, {pipeline_mode = #tpu.pipeline_mode<synchronous>, transform_indices = @transform_3, window_bounds = array<i64: 64, 32>}, {pipeline_mode = #tpu.pipeline_mode<synchronous>, transform_indices = @transform_4, window_bounds = array<i64: 64, 32>}, {pipeline_mode = #tpu.pipeline_mode<synchronous>, transform_indices = @transform_5, window_bounds = array<i64: 64, 64>}, {pipeline_mode = #tpu.pipeline_mode<synchronous>, transform_indices = @transform_6, window_bounds = array<i64: 2, 32, 96>}, {pipeline_mode = #tpu.pipeline_mode<synchronous>, transform_indices = @transform_7, window_bounds = array<i64: 2, 1, 96>}, {pipeline_mode = #tpu.pipeline_mode<synchronous>, transform_indices = @transform_8, window_bounds = array<i64: 2, 32, 32>}, {pipeline_mode = #tpu.pipeline_mode<synchronous>, transform_indices = @transform_9, window_bounds = array<i64: 2, 1, 32>}, {pipeline_mode = #tpu.pipeline_mode<synchronous>, transform_indices = @transform_10, window_bounds = array<i64: 2, 1, 32>}, {pipeline_mode = #tpu.pipeline_mode<synchronous>, transform_indices = @transform_11, window_bounds = array<i64: 2, 1, 32>}, {pipeline_mode = #tpu.pipeline_mode<synchronous>, transform_indices = @transform_12, window_bounds = array<i64: 2, 32, 64>}, {pipeline_mode = #tpu.pipeline_mode<synchronous>, transform_indices = @transform_13, window_bounds = array<i64: 2, 1, 64>}, {pipeline_mode = #tpu.pipeline_mode<synchronous>, transform_indices = @transform_14, window_bounds = array<i64: 2, 64, 32>}, {pipeline_mode = #tpu.pipeline_mode<synchronous>, transform_indices = @transform_15, window_bounds = array<i64: 2, 1, 32>}, {pipeline_mode = #tpu.pipeline_mode<synchronous>, transform_indices = @transform_16, window_bounds = array<i64: 2, 1, 32>}, {pipeline_mode = #tpu.pipeline_mode<synchronous>, transform_indices = @transform_17, window_bounds = array<i64: 2, 1, 32>}, {pipeline_mode = #tpu.pipeline_mode<synchronous>, transform_indices = @transform_18, window_bounds = array<i64: 16, 32>}]} {
    %c0 = arith.constant 0 : index
    %c0_0 = arith.constant 0 : index
    %0 = vector.load %arg1[%c0, %c0_0] : memref<16x32xf32, #tpu.memory_space<vmem>>, vector<16x32xf32>
    %c0_1 = arith.constant 0 : index
    %c0_2 = arith.constant 0 : index
    %1 = vector.load %arg2[%c0_1, %c0_2] : memref<64x16xf32, #tpu.memory_space<vmem>>, vector<64x16xf32>
    %c0_3 = arith.constant 0 : index
    %c0_4 = arith.constant 0 : index
    %2 = vector.load %arg3[%c0_3, %c0_4] : memref<16x64xf32, #tpu.memory_space<vmem>>, vector<16x64xf32>
    %c0_5 = arith.constant 0 : index
    %c0_6 = arith.constant 0 : index
    %3 = vector.load %arg4[%c0_5, %c0_6] : memref<64x32xf32, #tpu.memory_space<vmem>>, vector<64x32xf32>
    %c0_7 = arith.constant 0 : index
    %c0_8 = arith.constant 0 : index
    %4 = vector.load %arg5[%c0_7, %c0_8] : memref<64x32xf32, #tpu.memory_space<vmem>>, vector<64x32xf32>
    %c0_9 = arith.constant 0 : index
    %c0_10 = arith.constant 0 : index
    %5 = vector.load %arg6[%c0_9, %c0_10] : memref<64x64xf32, #tpu.memory_space<vmem>>, vector<64x64xf32>
    %cst = arith.constant dense<0.000000e+00> : vector<64x32xf32>
    %6 = tpu.matmul %1, %0, %cst {dimension_numbers = #tpu.dot_dimension_numbers<[1], [0], [0], [1], [0, 0, 1, 1], [], []>} : vector<64x16xf32>, vector<16x32xf32>, vector<64x32xf32> -> vector<64x32xf32>
    %c0_11 = arith.constant 0 : index
    %c0_12 = arith.constant 0 : index
    %c0_13 = arith.constant 0 : index
    %7 = vector.load %arg7[%c0_11, %c0_12, %c0_13] : memref<2x32x96xf32, #tpu.memory_space<vmem>>, vector<1x32x96xf32>
    %8 = vector.shape_cast %7 : vector<1x32x96xf32> to vector<32x96xf32>
    %cst_14 = arith.constant dense<0.000000e+00> : vector<64x96xf32>
    %9 = tpu.matmul %6, %8, %cst_14 {dimension_numbers = #tpu.dot_dimension_numbers<[1], [0], [0], [1], [0, 0, 1, 1], [], []>} : vector<64x32xf32>, vector<32x96xf32>, vector<64x96xf32> -> vector<64x96xf32>
    %c0_15 = arith.constant 0 : index
    %c0_16 = arith.constant 0 : index
    %c0_17 = arith.constant 0 : index
    %10 = vector.load %arg8[%c0_15, %c0_16, %c0_17] : memref<2x1x96xf32, #tpu.memory_space<vmem>>, vector<1x1x96xf32>
    %11 = vector.shape_cast %10 : vector<1x1x96xf32> to vector<1x96xf32>
    %12 = vector.broadcast %11 : vector<1x96xf32> to vector<64x96xf32>
    %13 = arith.addf %9, %12 : vector<64x96xf32>
    %14 = vector.extract_strided_slice %13 {offsets = [0, 0], sizes = [64, 32], strides = [1, 1]} : vector<64x96xf32> to vector<64x32xf32>
    %15 = arith.mulf %14, %3 : vector<64x32xf32>
    %16 = vector.extract_strided_slice %13 {offsets = [0, 32], sizes = [64, 32], strides = [1, 1]} : vector<64x96xf32> to vector<64x32xf32>
    %17 = vector.extract_strided_slice %13 {offsets = [0, 64], sizes = [64, 32], strides = [1, 1]} : vector<64x96xf32> to vector<64x32xf32>
    %18 = arith.mulf %17, %4 : vector<64x32xf32>
    %cst_18 = arith.constant dense<0.000000e+00> : vector<64x64xf32>
    %19 = tpu.matmul %15, %16, %cst_18 {dimension_numbers = #tpu.dot_dimension_numbers<[1], [1], [0], [0], [0, 0, 1, 0], [], []>} : vector<64x32xf32>, vector<64x32xf32>, vector<64x64xf32> -> vector<64x64xf32>
    %20 = arith.addf %19, %5 : vector<64x64xf32>
    %cst_19 = arith.constant dense<0xFF800000> : vector<64xf32>
    %21 = vector.multi_reduction <maximumf>, %20, %cst_19 [1] : vector<64x64xf32> to vector<64xf32>
    %22 = vector.shape_cast %21 : vector<64xf32> to vector<64x1xf32>
    %23 = vector.broadcast %22 : vector<64x1xf32> to vector<64x64xf32>
    %24 = arith.subf %20, %23 : vector<64x64xf32>
    %25 = math.exp %24 : vector<64x64xf32>
    %cst_20 = arith.constant dense<0.000000e+00> : vector<64xf32>
    %26 = vector.multi_reduction <add>, %25, %cst_20 [1] : vector<64x64xf32> to vector<64xf32>
    %27 = vector.shape_cast %26 : vector<64xf32> to vector<64x1xf32>
    %28 = vector.broadcast %27 : vector<64x1xf32> to vector<64x64xf32>
    %29 = arith.divf %25, %28 : vector<64x64xf32>
    %cst_21 = arith.constant dense<0.000000e+00> : vector<64x32xf32>
    %30 = tpu.matmul %29, %18, %cst_21 {dimension_numbers = #tpu.dot_dimension_numbers<[1], [0], [0], [1], [0, 0, 1, 1], [], []>} : vector<64x64xf32>, vector<64x32xf32>, vector<64x32xf32> -> vector<64x32xf32>
    %cst_22 = arith.constant dense<0.000000e+00> : vector<16x32xf32>
    %31 = tpu.matmul %2, %30, %cst_22 {dimension_numbers = #tpu.dot_dimension_numbers<[1], [0], [0], [1], [0, 0, 1, 1], [], []>} : vector<16x64xf32>, vector<64x32xf32>, vector<16x32xf32> -> vector<16x32xf32>
    %c0_23 = arith.constant 0 : index
    %c0_24 = arith.constant 0 : index
    %c0_25 = arith.constant 0 : index
    %32 = vector.load %arg9[%c0_23, %c0_24, %c0_25] : memref<2x32x32xf32, #tpu.memory_space<vmem>>, vector<1x32x32xf32>
    %33 = vector.shape_cast %32 : vector<1x32x32xf32> to vector<32x32xf32>
    %cst_26 = arith.constant dense<0.000000e+00> : vector<16x32xf32>
    %34 = tpu.matmul %31, %33, %cst_26 {dimension_numbers = #tpu.dot_dimension_numbers<[1], [0], [0], [1], [0, 0, 1, 1], [], []>} : vector<16x32xf32>, vector<32x32xf32>, vector<16x32xf32> -> vector<16x32xf32>
    %c0_27 = arith.constant 0 : index
    %c0_28 = arith.constant 0 : index
    %c0_29 = arith.constant 0 : index
    %35 = vector.load %arg10[%c0_27, %c0_28, %c0_29] : memref<2x1x32xf32, #tpu.memory_space<vmem>>, vector<1x1x32xf32>
    %36 = vector.shape_cast %35 : vector<1x1x32xf32> to vector<1x32xf32>
    %37 = vector.broadcast %36 : vector<1x32xf32> to vector<16x32xf32>
    %38 = arith.addf %34, %37 : vector<16x32xf32>
    %39 = arith.addf %0, %38 : vector<16x32xf32>
    %c0_30 = arith.constant 0 : index
    %c0_31 = arith.constant 0 : index
    %c0_32 = arith.constant 0 : index
    %40 = vector.load %arg11[%c0_30, %c0_31, %c0_32] : memref<2x1x32xf32, #tpu.memory_space<vmem>>, vector<1x1x32xf32>
    %41 = vector.shape_cast %40 : vector<1x1x32xf32> to vector<1x32xf32>
    %c0_33 = arith.constant 0 : index
    %c0_34 = arith.constant 0 : index
    %c0_35 = arith.constant 0 : index
    %42 = vector.load %arg12[%c0_33, %c0_34, %c0_35] : memref<2x1x32xf32, #tpu.memory_space<vmem>>, vector<1x1x32xf32>
    %43 = vector.shape_cast %42 : vector<1x1x32xf32> to vector<1x32xf32>
    %cst_36 = arith.constant dense<0.000000e+00> : vector<16xf32>
    %44 = vector.multi_reduction <add>, %39, %cst_36 [1] : vector<16x32xf32> to vector<16xf32>
    %45 = vector.shape_cast %44 : vector<16xf32> to vector<16x1xf32>
    %cst_37 = arith.constant 3.200000e+01 : f32
    %46 = vector.broadcast %cst_37 : f32 to vector<16x1xf32>
    %47 = arith.divf %45, %46 : vector<16x1xf32>
    %48 = vector.broadcast %47 : vector<16x1xf32> to vector<16x32xf32>
    %49 = arith.subf %39, %48 : vector<16x32xf32>
    %50 = arith.mulf %49, %49 : vector<16x32xf32>
    %cst_38 = arith.constant dense<0.000000e+00> : vector<16xf32>
    %51 = vector.multi_reduction <add>, %50, %cst_38 [1] : vector<16x32xf32> to vector<16xf32>
    %52 = vector.shape_cast %51 : vector<16xf32> to vector<16x1xf32>
    %cst_39 = arith.constant 3.200000e+01 : f32
    %53 = vector.broadcast %cst_39 : f32 to vector<16x1xf32>
    %54 = arith.divf %52, %53 : vector<16x1xf32>
    %55 = math.sqrt %54 : vector<16x1xf32>
    %56 = vector.broadcast %47 : vector<16x1xf32> to vector<16x32xf32>
    %57 = arith.subf %39, %56 : vector<16x32xf32>
    %cst_40 = arith.constant 1.000000e-10 : f32
    %58 = vector.broadcast %cst_40 : f32 to vector<16x1xf32>
    %59 = arith.addf %55, %58 : vector<16x1xf32>
    %60 = vector.broadcast %59 : vector<16x1xf32> to vector<16x32xf32>
    %61 = arith.divf %57, %60 : vector<16x32xf32>
    %62 = vector.broadcast %41 : vector<1x32xf32> to vector<16x32xf32>
    %63 = arith.mulf %61, %62 : vector<16x32xf32>
    %64 = vector.broadcast %43 : vector<1x32xf32> to vector<16x32xf32>
    %65 = arith.addf %63, %64 : vector<16x32xf32>
    %c0_41 = arith.constant 0 : index
    %c0_42 = arith.constant 0 : index
    %c0_43 = arith.constant 0 : index
    %66 = vector.load %arg13[%c0_41, %c0_42, %c0_43] : memref<2x32x64xf32, #tpu.memory_space<vmem>>, vector<1x32x64xf32>
    %67 = vector.shape_cast %66 : vector<1x32x64xf32> to vector<32x64xf32>
    %cst_44 = arith.constant dense<0.000000e+00> : vector<16x64xf32>
    %68 = tpu.matmul %65, %67, %cst_44 {dimension_numbers = #tpu.dot_dimension_numbers<[1], [0], [0], [1], [0, 0, 1, 1], [], []>} : vector<16x32xf32>, vector<32x64xf32>, vector<16x64xf32> -> vector<16x64xf32>
    %c0_45 = arith.constant 0 : index
    %c0_46 = arith.constant 0 : index
    %c0_47 = arith.constant 0 : index
    %69 = vector.load %arg14[%c0_45, %c0_46, %c0_47] : memref<2x1x64xf32, #tpu.memory_space<vmem>>, vector<1x1x64xf32>
    %70 = vector.shape_cast %69 : vector<1x1x64xf32> to vector<1x64xf32>
    %71 = vector.broadcast %70 : vector<1x64xf32> to vector<16x64xf32>
    %72 = arith.addf %68, %71 : vector<16x64xf32>
    %cst_48 = arith.constant 0.000000e+00 : f32
    %73 = vector.broadcast %cst_48 : f32 to vector<16x64xf32>
    %74 = arith.maximumf %72, %73 : vector<16x64xf32>
    %c0_49 = arith.constant 0 : index
    %c0_50 = arith.constant 0 : index
    %c0_51 = arith.constant 0 : index
    %75 = vector.load %arg15[%c0_49, %c0_50, %c0_51] : memref<2x64x32xf32, #tpu.memory_space<vmem>>, vector<1x64x32xf32>
    %76 = vector.shape_cast %75 : vector<1x64x32xf32> to vector<64x32xf32>
    %cst_52 = arith.constant dense<0.000000e+00> : vector<16x32xf32>
    %77 = tpu.matmul %74, %76, %cst_52 {dimension_numbers = #tpu.dot_dimension_numbers<[1], [0], [0], [1], [0, 0, 1, 1], [], []>} : vector<16x64xf32>, vector<64x32xf32>, vector<16x32xf32> -> vector<16x32xf32>
    %c0_53 = arith.constant 0 : index
    %c0_54 = arith.constant 0 : index
    %c0_55 = arith.constant 0 : index
    %78 = vector.load %arg16[%c0_53, %c0_54, %c0_55] : memref<2x1x32xf32, #tpu.memory_space<vmem>>, vector<1x1x32xf32>
    %79 = vector.shape_cast %78 : vector<1x1x32xf32> to vector<1x32xf32>
    %80 = vector.broadcast %79 : vector<1x32xf32> to vector<16x32xf32>
    %81 = arith.addf %77, %80 : vector<16x32xf32>
    %82 = arith.addf %65, %81 : vector<16x32xf32>
    %c0_56 = arith.constant 0 : index
    %c0_57 = arith.constant 0 : index
    %c0_58 = arith.constant 0 : index
    %83 = vector.load %arg17[%c0_56, %c0_57, %c0_58] : memref<2x1x32xf32, #tpu.memory_space<vmem>>, vector<1x1x32xf32>
    %84 = vector.shape_cast %83 : vector<1x1x32xf32> to vector<1x32xf32>
    %c0_59 = arith.constant 0 : index
    %c0_60 = arith.constant 0 : index
    %c0_61 = arith.constant 0 : index
    %85 = vector.load %arg18[%c0_59, %c0_60, %c0_61] : memref<2x1x32xf32, #tpu.memory_space<vmem>>, vector<1x1x32xf32>
    %86 = vector.shape_cast %85 : vector<1x1x32xf32> to vector<1x32xf32>
    %cst_62 = arith.constant dense<0.000000e+00> : vector<16xf32>
    %87 = vector.multi_reduction <add>, %82, %cst_62 [1] : vector<16x32xf32> to vector<16xf32>
    %88 = vector.shape_cast %87 : vector<16xf32> to vector<16x1xf32>
    %cst_63 = arith.constant 3.200000e+01 : f32
    %89 = vector.broadcast %cst_63 : f32 to vector<16x1xf32>
    %90 = arith.divf %88, %89 : vector<16x1xf32>
    %91 = vector.broadcast %90 : vector<16x1xf32> to vector<16x32xf32>
    %92 = arith.subf %82, %91 : vector<16x32xf32>
    %93 = arith.mulf %92, %92 : vector<16x32xf32>
    %cst_64 = arith.constant dense<0.000000e+00> : vector<16xf32>
    %94 = vector.multi_reduction <add>, %93, %cst_64 [1] : vector<16x32xf32> to vector<16xf32>
    %95 = vector.shape_cast %94 : vector<16xf32> to vector<16x1xf32>
    %cst_65 = arith.constant 3.200000e+01 : f32
    %96 = vector.broadcast %cst_65 : f32 to vector<16x1xf32>
    %97 = arith.divf %95, %96 : vector<16x1xf32>
    %98 = math.sqrt %97 : vector<16x1xf32>
    %99 = vector.broadcast %90 : vector<16x1xf32> to vector<16x32xf32>
    %100 = arith.subf %82, %99 : vector<16x32xf32>
    %cst_66 = arith.constant 1.000000e-10 : f32
    %101 = vector.broadcast %cst_66 : f32 to vector<16x1xf32>
    %102 = arith.addf %98, %101 : vector<16x1xf32>
    %103 = vector.broadcast %102 : vector<16x1xf32> to vector<16x32xf32>
    %104 = arith.divf %100, %103 : vector<16x32xf32>
    %105 = vector.broadcast %84 : vector<1x32xf32> to vector<16x32xf32>
    %106 = arith.mulf %104, %105 : vector<16x32xf32>
    %107 = vector.broadcast %86 : vector<1x32xf32> to vector<16x32xf32>
    %108 = arith.addf %106, %107 : vector<16x32xf32>
    %cst_67 = arith.constant dense<0.000000e+00> : vector<64x32xf32>
    %109 = tpu.matmul %1, %108, %cst_67 {dimension_numbers = #tpu.dot_dimension_numbers<[1], [0], [0], [1], [0, 0, 1, 1], [], []>} : vector<64x16xf32>, vector<16x32xf32>, vector<64x32xf32> -> vector<64x32xf32>
    %c1 = arith.constant 1 : index
    %c0_68 = arith.constant 0 : index
    %c0_69 = arith.constant 0 : index
    %110 = vector.load %arg7[%c1, %c0_68, %c0_69] : memref<2x32x96xf32, #tpu.memory_space<vmem>>, vector<1x32x96xf32>
    %111 = vector.shape_cast %110 : vector<1x32x96xf32> to vector<32x96xf32>
    %cst_70 = arith.constant dense<0.000000e+00> : vector<64x96xf32>
    %112 = tpu.matmul %109, %111, %cst_70 {dimension_numbers = #tpu.dot_dimension_numbers<[1], [0], [0], [1], [0, 0, 1, 1], [], []>} : vector<64x32xf32>, vector<32x96xf32>, vector<64x96xf32> -> vector<64x96xf32>
    %c1_71 = arith.constant 1 : index
    %c0_72 = arith.constant 0 : index
    %c0_73 = arith.constant 0 : index
    %113 = vector.load %arg8[%c1_71, %c0_72, %c0_73] : memref<2x1x96xf32, #tpu.memory_space<vmem>>, vector<1x1x96xf32>
    %114 = vector.shape_cast %113 : vector<1x1x96xf32> to vector<1x96xf32>
    %115 = vector.broadcast %114 : vector<1x96xf32> to vector<64x96xf32>
    %116 = arith.addf %112, %115 : vector<64x96xf32>
    %117 = vector.extract_strided_slice %116 {offsets = [0, 0], sizes = [64, 32], strides = [1, 1]} : vector<64x96xf32> to vector<64x32xf32>
    %118 = arith.mulf %117, %3 : vector<64x32xf32>
    %119 = vector.extract_strided_slice %116 {offsets = [0, 32], sizes = [64, 32], strides = [1, 1]} : vector<64x96xf32> to vector<64x32xf32>
    %120 = vector.extract_strided_slice %116 {offsets = [0, 64], sizes = [64, 32], strides = [1, 1]} : vector<64x96xf32> to vector<64x32xf32>
    %121 = arith.mulf %120, %4 : vector<64x32xf32>
    %cst_74 = arith.constant dense<0.000000e+00> : vector<64x64xf32>
    %122 = tpu.matmul %118, %119, %cst_74 {dimension_numbers = #tpu.dot_dimension_numbers<[1], [1], [0], [0], [0, 0, 1, 0], [], []>} : vector<64x32xf32>, vector<64x32xf32>, vector<64x64xf32> -> vector<64x64xf32>
    %123 = arith.addf %122, %5 : vector<64x64xf32>
    %cst_75 = arith.constant dense<0xFF800000> : vector<64xf32>
    %124 = vector.multi_reduction <maximumf>, %123, %cst_75 [1] : vector<64x64xf32> to vector<64xf32>
    %125 = vector.shape_cast %124 : vector<64xf32> to vector<64x1xf32>
    %126 = vector.broadcast %125 : vector<64x1xf32> to vector<64x64xf32>
    %127 = arith.subf %123, %126 : vector<64x64xf32>
    %128 = math.exp %127 : vector<64x64xf32>
    %cst_76 = arith.constant dense<0.000000e+00> : vector<64xf32>
    %129 = vector.multi_reduction <add>, %128, %cst_76 [1] : vector<64x64xf32> to vector<64xf32>
    %130 = vector.shape_cast %129 : vector<64xf32> to vector<64x1xf32>
    %131 = vector.broadcast %130 : vector<64x1xf32> to vector<64x64xf32>
    %132 = arith.divf %128, %131 : vector<64x64xf32>
    %cst_77 = arith.constant dense<0.000000e+00> : vector<64x32xf32>
    %133 = tpu.matmul %132, %121, %cst_77 {dimension_numbers = #tpu.dot_dimension_numbers<[1], [0], [0], [1], [0, 0, 1, 1], [], []>} : vector<64x64xf32>, vector<64x32xf32>, vector<64x32xf32> -> vector<64x32xf32>
    %cst_78 = arith.constant dense<0.000000e+00> : vector<16x32xf32>
    %134 = tpu.matmul %2, %133, %cst_78 {dimension_numbers = #tpu.dot_dimension_numbers<[1], [0], [0], [1], [0, 0, 1, 1], [], []>} : vector<16x64xf32>, vector<64x32xf32>, vector<16x32xf32> -> vector<16x32xf32>
    %c1_79 = arith.constant 1 : index
    %c0_80 = arith.constant 0 : index
    %c0_81 = arith.constant 0 : index
    %135 = vector.load %arg9[%c1_79, %c0_80, %c0_81] : memref<2x32x32xf32, #tpu.memory_space<vmem>>, vector<1x32x32xf32>
    %136 = vector.shape_cast %135 : vector<1x32x32xf32> to vector<32x32xf32>
    %cst_82 = arith.constant dense<0.000000e+00> : vector<16x32xf32>
    %137 = tpu.matmul %134, %136, %cst_82 {dimension_numbers = #tpu.dot_dimension_numbers<[1], [0], [0], [1], [0, 0, 1, 1], [], []>} : vector<16x32xf32>, vector<32x32xf32>, vector<16x32xf32> -> vector<16x32xf32>
    %c1_83 = arith.constant 1 : index
    %c0_84 = arith.constant 0 : index
    %c0_85 = arith.constant 0 : index
    %138 = vector.load %arg10[%c1_83, %c0_84, %c0_85] : memref<2x1x32xf32, #tpu.memory_space<vmem>>, vector<1x1x32xf32>
    %139 = vector.shape_cast %138 : vector<1x1x32xf32> to vector<1x32xf32>
    %140 = vector.broadcast %139 : vector<1x32xf32> to vector<16x32xf32>
    %141 = arith.addf %137, %140 : vector<16x32xf32>
    %142 = arith.addf %108, %141 : vector<16x32xf32>
    %c1_86 = arith.constant 1 : index
    %c0_87 = arith.constant 0 : index
    %c0_88 = arith.constant 0 : index
    %143 = vector.load %arg11[%c1_86, %c0_87, %c0_88] : memref<2x1x32xf32, #tpu.memory_space<vmem>>, vector<1x1x32xf32>
    %144 = vector.shape_cast %143 : vector<1x1x32xf32> to vector<1x32xf32>
    %c1_89 = arith.constant 1 : index
    %c0_90 = arith.constant 0 : index
    %c0_91 = arith.constant 0 : index
    %145 = vector.load %arg12[%c1_89, %c0_90, %c0_91] : memref<2x1x32xf32, #tpu.memory_space<vmem>>, vector<1x1x32xf32>
    %146 = vector.shape_cast %145 : vector<1x1x32xf32> to vector<1x32xf32>
    %cst_92 = arith.constant dense<0.000000e+00> : vector<16xf32>
    %147 = vector.multi_reduction <add>, %142, %cst_92 [1] : vector<16x32xf32> to vector<16xf32>
    %148 = vector.shape_cast %147 : vector<16xf32> to vector<16x1xf32>
    %cst_93 = arith.constant 3.200000e+01 : f32
    %149 = vector.broadcast %cst_93 : f32 to vector<16x1xf32>
    %150 = arith.divf %148, %149 : vector<16x1xf32>
    %151 = vector.broadcast %150 : vector<16x1xf32> to vector<16x32xf32>
    %152 = arith.subf %142, %151 : vector<16x32xf32>
    %153 = arith.mulf %152, %152 : vector<16x32xf32>
    %cst_94 = arith.constant dense<0.000000e+00> : vector<16xf32>
    %154 = vector.multi_reduction <add>, %153, %cst_94 [1] : vector<16x32xf32> to vector<16xf32>
    %155 = vector.shape_cast %154 : vector<16xf32> to vector<16x1xf32>
    %cst_95 = arith.constant 3.200000e+01 : f32
    %156 = vector.broadcast %cst_95 : f32 to vector<16x1xf32>
    %157 = arith.divf %155, %156 : vector<16x1xf32>
    %158 = math.sqrt %157 : vector<16x1xf32>
    %159 = vector.broadcast %150 : vector<16x1xf32> to vector<16x32xf32>
    %160 = arith.subf %142, %159 : vector<16x32xf32>
    %cst_96 = arith.constant 1.000000e-10 : f32
    %161 = vector.broadcast %cst_96 : f32 to vector<16x1xf32>
    %162 = arith.addf %158, %161 : vector<16x1xf32>
    %163 = vector.broadcast %162 : vector<16x1xf32> to vector<16x32xf32>
    %164 = arith.divf %160, %163 : vector<16x32xf32>
    %165 = vector.broadcast %144 : vector<1x32xf32> to vector<16x32xf32>
    %166 = arith.mulf %164, %165 : vector<16x32xf32>
    %167 = vector.broadcast %146 : vector<1x32xf32> to vector<16x32xf32>
    %168 = arith.addf %166, %167 : vector<16x32xf32>
    %c1_97 = arith.constant 1 : index
    %c0_98 = arith.constant 0 : index
    %c0_99 = arith.constant 0 : index
    %169 = vector.load %arg13[%c1_97, %c0_98, %c0_99] : memref<2x32x64xf32, #tpu.memory_space<vmem>>, vector<1x32x64xf32>
    %170 = vector.shape_cast %169 : vector<1x32x64xf32> to vector<32x64xf32>
    %cst_100 = arith.constant dense<0.000000e+00> : vector<16x64xf32>
    %171 = tpu.matmul %168, %170, %cst_100 {dimension_numbers = #tpu.dot_dimension_numbers<[1], [0], [0], [1], [0, 0, 1, 1], [], []>} : vector<16x32xf32>, vector<32x64xf32>, vector<16x64xf32> -> vector<16x64xf32>
    %c1_101 = arith.constant 1 : index
    %c0_102 = arith.constant 0 : index
    %c0_103 = arith.constant 0 : index
    %172 = vector.load %arg14[%c1_101, %c0_102, %c0_103] : memref<2x1x64xf32, #tpu.memory_space<vmem>>, vector<1x1x64xf32>
    %173 = vector.shape_cast %172 : vector<1x1x64xf32> to vector<1x64xf32>
    %174 = vector.broadcast %173 : vector<1x64xf32> to vector<16x64xf32>
    %175 = arith.addf %171, %174 : vector<16x64xf32>
    %cst_104 = arith.constant 0.000000e+00 : f32
    %176 = vector.broadcast %cst_104 : f32 to vector<16x64xf32>
    %177 = arith.maximumf %175, %176 : vector<16x64xf32>
    %c1_105 = arith.constant 1 : index
    %c0_106 = arith.constant 0 : index
    %c0_107 = arith.constant 0 : index
    %178 = vector.load %arg15[%c1_105, %c0_106, %c0_107] : memref<2x64x32xf32, #tpu.memory_space<vmem>>, vector<1x64x32xf32>
    %179 = vector.shape_cast %178 : vector<1x64x32xf32> to vector<64x32xf32>
    %cst_108 = arith.constant dense<0.000000e+00> : vector<16x32xf32>
    %180 = tpu.matmul %177, %179, %cst_108 {dimension_numbers = #tpu.dot_dimension_numbers<[1], [0], [0], [1], [0, 0, 1, 1], [], []>} : vector<16x64xf32>, vector<64x32xf32>, vector<16x32xf32> -> vector<16x32xf32>
    %c1_109 = arith.constant 1 : index
    %c0_110 = arith.constant 0 : index
    %c0_111 = arith.constant 0 : index
    %181 = vector.load %arg16[%c1_109, %c0_110, %c0_111] : memref<2x1x32xf32, #tpu.memory_space<vmem>>, vector<1x1x32xf32>
    %182 = vector.shape_cast %181 : vector<1x1x32xf32> to vector<1x32xf32>
    %183 = vector.broadcast %182 : vector<1x32xf32> to vector<16x32xf32>
    %184 = arith.addf %180, %183 : vector<16x32xf32>
    %185 = arith.addf %168, %184 : vector<16x32xf32>
    %c1_112 = arith.constant 1 : index
    %c0_113 = arith.constant 0 : index
    %c0_114 = arith.constant 0 : index
    %186 = vector.load %arg17[%c1_112, %c0_113, %c0_114] : memref<2x1x32xf32, #tpu.memory_space<vmem>>, vector<1x1x32xf32>
    %187 = vector.shape_cast %186 : vector<1x1x32xf32> to vector<1x32xf32>
    %c1_115 = arith.constant 1 : index
    %c0_116 = arith.constant 0 : index
    %c0_117 = arith.constant 0 : index
    %188 = vector.load %arg18[%c1_115, %c0_116, %c0_117] : memref<2x1x32xf32, #tpu.memory_space<vmem>>, vector<1x1x32xf32>
    %189 = vector.shape_cast %188 : vector<1x1x32xf32> to vector<1x32xf32>
    %cst_118 = arith.constant dense<0.000000e+00> : vector<16xf32>
    %190 = vector.multi_reduction <add>, %185, %cst_118 [1] : vector<16x32xf32> to vector<16xf32>
    %191 = vector.shape_cast %190 : vector<16xf32> to vector<16x1xf32>
    %cst_119 = arith.constant 3.200000e+01 : f32
    %192 = vector.broadcast %cst_119 : f32 to vector<16x1xf32>
    %193 = arith.divf %191, %192 : vector<16x1xf32>
    %194 = vector.broadcast %193 : vector<16x1xf32> to vector<16x32xf32>
    %195 = arith.subf %185, %194 : vector<16x32xf32>
    %196 = arith.mulf %195, %195 : vector<16x32xf32>
    %cst_120 = arith.constant dense<0.000000e+00> : vector<16xf32>
    %197 = vector.multi_reduction <add>, %196, %cst_120 [1] : vector<16x32xf32> to vector<16xf32>
    %198 = vector.shape_cast %197 : vector<16xf32> to vector<16x1xf32>
    %cst_121 = arith.constant 3.200000e+01 : f32
    %199 = vector.broadcast %cst_121 : f32 to vector<16x1xf32>
    %200 = arith.divf %198, %199 : vector<16x1xf32>
    %201 = math.sqrt %200 : vector<16x1xf32>
    %202 = vector.broadcast %193 : vector<16x1xf32> to vector<16x32xf32>
    %203 = arith.subf %185, %202 : vector<16x32xf32>
    %cst_122 = arith.constant 1.000000e-10 : f32
    %204 = vector.broadcast %cst_122 : f32 to vector<16x1xf32>
    %205 = arith.addf %201, %204 : vector<16x1xf32>
    %206 = vector.broadcast %205 : vector<16x1xf32> to vector<16x32xf32>
    %207 = arith.divf %203, %206 : vector<16x32xf32>
    %208 = vector.broadcast %187 : vector<1x32xf32> to vector<16x32xf32>
    %209 = arith.mulf %207, %208 : vector<16x32xf32>
    %210 = vector.broadcast %189 : vector<1x32xf32> to vector<16x32xf32>
    %211 = arith.addf %209, %210 : vector<16x32xf32>
    %c0_123 = arith.constant 0 : index
    %c0_124 = arith.constant 0 : index
    %212 = vector.load %arg19[%c0_123, %c0_124] : memref<16x32xf32, #tpu.memory_space<vmem>>, vector<16x32xf32>
    tpu.vector_store %arg19[%c0_123, %c0_124], %211 {strides = array<i32>} : memref<16x32xf32, #tpu.memory_space<vmem>>, vector<16x32xf32>,
    return
  }
  func.func @transform_0(%arg0: i32) -> (i32, i32) {
    %c0_i32 = arith.constant 0 : i32
    %c0_i32_0 = arith.constant 0 : i32
    %c0_i32_1 = arith.constant 0 : i32
    return %c0_i32, %c0_i32_0 : i32, i32
  }
  func.func @transform_1(%arg0: i32) -> (i32, i32) {
    %c0_i32 = arith.constant 0 : i32
    %c0_i32_0 = arith.constant 0 : i32
    %c0_i32_1 = arith.constant 0 : i32
    return %c0_i32, %c0_i32_0 : i32, i32
  }
  func.func @transform_2(%arg0: i32) -> (i32, i32) {
    %c0_i32 = arith.constant 0 : i32
    %c0_i32_0 = arith.constant 0 : i32
    %c0_i32_1 = arith.constant 0 : i32
    return %c0_i32, %c0_i32_0 : i32, i32
  }
  func.func @transform_3(%arg0: i32) -> (i32, i32) {
    %c0_i32 = arith.constant 0 : i32
    %c0_i32_0 = arith.constant 0 : i32
    %c0_i32_1 = arith.constant 0 : i32
    return %c0_i32, %c0_i32_0 : i32, i32
  }
  func.func @transform_4(%arg0: i32) -> (i32, i32) {
    %c0_i32 = arith.constant 0 : i32
    %c0_i32_0 = arith.constant 0 : i32
    %c0_i32_1 = arith.constant 0 : i32
    return %c0_i32, %c0_i32_0 : i32, i32
  }
  func.func @transform_5(%arg0: i32) -> (i32, i32) {
    %c0_i32 = arith.constant 0 : i32
    %c0_i32_0 = arith.constant 0 : i32
    %c0_i32_1 = arith.constant 0 : i32
    return %c0_i32, %c0_i32_0 : i32, i32
  }
  func.func @transform_6(%arg0: i32) -> (i32, i32, i32) {
    %c0_i32 = arith.constant 0 : i32
    %c0_i32_0 = arith.constant 0 : i32
    %c0_i32_1 = arith.constant 0 : i32
    %c0_i32_2 = arith.constant 0 : i32
    return %c0_i32, %c0_i32_0, %c0_i32_1 : i32, i32, i32
  }
  func.func @transform_7(%arg0: i32) -> (i32, i32, i32) {
    %c0_i32 = arith.constant 0 : i32
    %c0_i32_0 = arith.constant 0 : i32
    %c0_i32_1 = arith.constant 0 : i32
    %c0_i32_2 = arith.constant 0 : i32
    return %c0_i32, %c0_i32_0, %c0_i32_1 : i32, i32, i32
  }
  func.func @transform_8(%arg0: i32) -> (i32, i32, i32) {
    %c0_i32 = arith.constant 0 : i32
    %c0_i32_0 = arith.constant 0 : i32
    %c0_i32_1 = arith.constant 0 : i32
    %c0_i32_2 = arith.constant 0 : i32
    return %c0_i32, %c0_i32_0, %c0_i32_1 : i32, i32, i32
  }
  func.func @transform_9(%arg0: i32) -> (i32, i32, i32) {
    %c0_i32 = arith.constant 0 : i32
    %c0_i32_0 = arith.constant 0 : i32
    %c0_i32_1 = arith.constant 0 : i32
    %c0_i32_2 = arith.constant 0 : i32
    return %c0_i32, %c0_i32_0, %c0_i32_1 : i32, i32, i32
  }
  func.func @transform_10(%arg0: i32) -> (i32, i32, i32) {
    %c0_i32 = arith.constant 0 : i32
    %c0_i32_0 = arith.constant 0 : i32
    %c0_i32_1 = arith.constant 0 : i32
    %c0_i32_2 = arith.constant 0 : i32
    return %c0_i32, %c0_i32_0, %c0_i32_1 : i32, i32, i32
  }
  func.func @transform_11(%arg0: i32) -> (i32, i32, i32) {
    %c0_i32 = arith.constant 0 : i32
    %c0_i32_0 = arith.constant 0 : i32
    %c0_i32_1 = arith.constant 0 : i32
    %c0_i32_2 = arith.constant 0 : i32
    return %c0_i32, %c0_i32_0, %c0_i32_1 : i32, i32, i32
  }
  func.func @transform_12(%arg0: i32) -> (i32, i32, i32) {
    %c0_i32 = arith.constant 0 : i32
    %c0_i32_0 = arith.constant 0 : i32
    %c0_i32_1 = arith.constant 0 : i32
    %c0_i32_2 = arith.constant 0 : i32
    return %c0_i32, %c0_i32_0, %c0_i32_1 : i32, i32, i32
  }
  func.func @transform_13(%arg0: i32) -> (i32, i32, i32) {
    %c0_i32 = arith.constant 0 : i32
    %c0_i32_0 = arith.constant 0 : i32
    %c0_i32_1 = arith.constant 0 : i32
    %c0_i32_2 = arith.constant 0 : i32
    return %c0_i32, %c0_i32_0, %c0_i32_1 : i32, i32, i32
  }
  func.func @transform_14(%arg0: i32) -> (i32, i32, i32) {
    %c0_i32 = arith.constant 0 : i32
    %c0_i32_0 = arith.constant 0 : i32
    %c0_i32_1 = arith.constant 0 : i32
    %c0_i32_2 = arith.constant 0 : i32
    return %c0_i32, %c0_i32_0, %c0_i32_1 : i32, i32, i32
  }
  func.func @transform_15(%arg0: i32) -> (i32, i32, i32) {
    %c0_i32 = arith.constant 0 : i32
    %c0_i32_0 = arith.constant 0 : i32
    %c0_i32_1 = arith.constant 0 : i32
    %c0_i32_2 = arith.constant 0 : i32
    return %c0_i32, %c0_i32_0, %c0_i32_1 : i32, i32, i32
  }
  func.func @transform_16(%arg0: i32) -> (i32, i32, i32) {
    %c0_i32 = arith.constant 0 : i32
    %c0_i32_0 = arith.constant 0 : i32
    %c0_i32_1 = arith.constant 0 : i32
    %c0_i32_2 = arith.constant 0 : i32
    return %c0_i32, %c0_i32_0, %c0_i32_1 : i32, i32, i32
  }
  func.func @transform_17(%arg0: i32) -> (i32, i32, i32) {
    %c0_i32 = arith.constant 0 : i32
    %c0_i32_0 = arith.constant 0 : i32
    %c0_i32_1 = arith.constant 0 : i32
    %c0_i32_2 = arith.constant 0 : i32
    return %c0_i32, %c0_i32_0, %c0_i32_1 : i32, i32, i32
  }
  func.func @transform_18(%arg0: i32) -> (i32, i32) {
    %c0_i32 = arith.constant 0 : i32
    %c0_i32_0 = arith.constant 0 : i32
    %c0_i32_1 = arith.constant 0 : i32
    return %c0_i32, %c0_i32_0 : i32, i32
  }
}

</mosaic_0001>

<bundles_post_ra>
// kernel: tpu_custom_call.1
= control target key start
LH: loop header
LB: loop body
LE: loop exit
PB: predicated region body
PF: predicated region fallthrough
CT: control target
= control target key end

     0   :  { %s4120_s0 = inlined_call_operand.vmem [shape: f32[16,32], index: 0, kind: input, shape index: {}]   ;;  %s4121_s1 = inlined_call_operand.vmem [shape: f32[64,16], index: 1, kind: input, shape index: {}]   ;;  %s4122_s2 = inlined_call_operand.vmem [shape: f32[16,64], index: 2, kind: input, shape index: {}]   ;;  %s4123_s3 = inlined_call_operand.vmem [shape: f32[64,32], index: 3, kind: input, shape index: {}]   ;;  %s4124_s4 = inlined_call_operand.vmem [shape: f32[64,32], index: 4, kind: input, shape index: {}]   ;;  %s4125_s5 = inlined_call_operand.vmem [shape: f32[64,64], index: 5, kind: input, shape index: {}]   ;;  %s4126_s6 = inlined_call_operand.vmem [shape: f32[2,32,96], index: 6, kind: input, shape index: {}]   ;;  %s4127_s7 = inlined_call_operand.vmem [shape: f32[2,1,96], index: 7, kind: input, shape index: {}]   ;;  %s4128_s8 = inlined_call_operand.vmem [shape: f32[2,32,32], index: 8, kind: input, shape index: {}]   ;;  %s4129_s9 = inlined_call_operand.vmem [shape: f32[2,1,32], index: 9, kind: input, shape index: {}]   ;;  %s4130_s10 = inlined_call_operand.vmem [shape: f32[2,1,32], index: 10, kind: input, shape index: {}]   ;;  %s4131_s11 = inlined_call_operand.vmem [shape: f32[2,1,32], index: 11, kind: input, shape index: {}]   ;;  %s4132_s12 = inlined_call_operand.vmem [shape: f32[2,32,64], index: 12, kind: input, shape index: {}]   ;;  %s4133_s13 = inlined_call_operand.vmem [shape: f32[2,1,64], index: 13, kind: input, shape index: {}]   ;;  %s4134_s14 = inlined_call_operand.vmem [shape: f32[2,64,32], index: 14, kind: input, shape index: {}]   ;;  %s4135_s15 = inlined_call_operand.vmem [shape: f32[2,1,32], index: 15, kind: input, shape index: {}]   ;;  %s4136_s16 = inlined_call_operand.vmem [shape: f32[2,1,32], index: 16, kind: input, shape index: {}]   ;;  %s4137_s17 = inlined_call_operand.vmem [shape: f32[2,1,32], index: 17, kind: input, shape index: {}]   ;;  %s4138_s18 = inlined_call_operand.hbm [shape: f32[16,32], index: 18, kind: output, shape index: {}]  }
   0x1   :  { %4142 = sst [smem:[#allocation5_spill]] %s4120_s0 }
   0x2   :  { %4143 = sst [smem:[#allocation6_spill]] %s4121_s1 }
   0x3   :  { %4144 = sst [smem:[#allocation7_spill]] %s4122_s2 }
   0x4   :  { %s4145_s29 = sld [smem:[#allocation5_spill]]  ;;  %vm96_vm0 = vcmask 130048   ;;  %v229_v5 = vld [vmem:[%s4126_s6 + $0x18] sm:$0xff]  ;;  %v228_v6 = vld [vmem:[%s4126_s6 + $0x10] sm:$0xff] }
   0x5   :  { %s4146_s20 = sld [smem:[#allocation6_spill]]  ;;  %2832 = vmatprep.subr.mxu1 %v229_v5 }
   0xa   :  { %v3354_v0 = vld [vmem:[%s4145_s29 + $0x8] sm:$0xff]  ;;  %v3359_v1 = vld [vmem:[%s4145_s29] sm:$0xff] }
   0xb   :  { %v3364_v2 = vld [vmem:[%s4146_s20] sm:$0xff]  ;;  %2816 = vmatprep.subr.mxu0 %v3354_v0  ;;  %v63_v3 = vld [vmem:[%s4146_s20 + $0x8] sm:$0xff]  ;;  %v64_v4 = vld [vmem:[%s4146_s20 + $0x10] sm:$0xff] }
   0xc   :  { %2820 = vmatprep.mubr.msk.f32.mxu0 %vm96_vm0, %v3364_v2  ;;  %2817 = vmatpush3.msra.mxu0 %v3354_v0 }
   0xd   :  { %2818 = vmatprep.subr.mxu0 %v3359_v1 }
   0xe   :  { %2819 = vmatpush3.msra.mxu0 %v3359_v1 }
   0xf   :  { %23 = vsyncpa [#allocation3], 0  ;;  %2821 = vmatmul.mubr.msk.f32.vlgmr.msra.gmra.mxu0 %vm96_vm0, %v63_v3  ;;  %2833 = vmatpush3.msra.mxu1 %v229_v5  ;;  %v65_v7 = vld [vmem:[%s4146_s20 + $0x18] sm:$0xff]  ;;  %v66_v8 = vld [vmem:[%s4146_s20 + $0x20] sm:$0xff]  ;;  %vm237_vm1 = vcmask 261120   ;;  %s3251_s19 = smov 96  }
  0x10   :  { %2823 = vmatprep.mubr.msk.f32.mxu0 %vm96_vm0, %v64_v4  ;;  %2834 = vmatprep.subr.mxu1 %v228_v6  ;;  %v67_v9 = vld [vmem:[%s4146_s20 + $0x28] sm:$0xff]  ;;  %v68_v10 = vld [vmem:[%s4146_s20 + $0x30] sm:$0xff]  ;;  %v69_v11 = vld [vmem:[%s4146_s20 + $0x38] sm:$0xff]  ;;  %s3252_s22 = smov 64   ;;  %vm584_vm2 = vcmask 523264   ;;  %s4147_s28 = sld [smem:[#allocation7_spill]] }
  0x11   :  { %2835 = vmatpush3.msra.mxu1 %v228_v6  ;;  %v227_v12 = vld [vmem:[%s4126_s6 + $0x8] sm:$0xff]  ;;  %v226_v13 = vld [vmem:[%s4126_s6] sm:$0xff]  ;;  %v87_v40 = vld [vmem:[%s4124_s4 + $0x38] sm:$0xff] }
  0x12   :  { %2836 = vmatprep.subr.mxu1 %v227_v12  ;;  %v2512_v23 = vld [vmem:[%s4127_s7] ss:$0 sm:$0xff]  ;;  %v85_v42 = vld [vmem:[%s4124_s4 + $0x28] sm:$0xff]  ;;  %v86_v43 = vld [vmem:[%s4124_s4 + $0x30] sm:$0xff] }
  0x13   :  { %2824 = vmatmul.mubr.msk.f32.gmra.mxu0 %vm96_vm0, %v65_v7  ;;  %2837 = vmatpush3.msra.mxu1 %v227_v12  ;;  %v72_v24 = vld [vmem:[%s4123_s3] sm:$0xff]  ;;  %v83_v45 = vld [vmem:[%s4124_s4 + $0x18] sm:$0xff]  ;;  %v82_v46 = vld [vmem:[%s4124_s4 + $0x10] sm:$0xff] }
  0x14   :  { %2826 = vmatprep.mubr.msk.f32.mxu0 %vm96_vm0, %v66_v8  ;;  %2838 = vmatprep.subr.mxu1 %v226_v13  ;;  %v84_v44 = vld [vmem:[%s4124_s4 + $0x20] sm:$0xff]  ;;  %v81_v47 = vld [vmem:[%s4124_s4 + $0x8] sm:$0xff]  ;;  %v3515_v58 = vld [vmem:[%s4123_s3 + $0x10] sm:$0xff] }
  0x15   :  { %2839 = vmatpush3.msra.mxu1 %v226_v13  ;;  %v80_v48 = vld [vmem:[%s4124_s4] sm:$0xff]  ;;  %v3510_v57 = vld [vmem:[%s4123_s3 + $0x8] sm:$0xff]  ;;  %v3523_v60 = vld [vmem:[%s4123_s3 + $0x18] sm:$0xff] }
  0x16   :  { %v3530_v62 = vld [vmem:[%s4123_s3 + $0x20] sm:$0xff]  ;;  %v3539_v3 = vld [vmem:[%s4123_s3 + $0x28] sm:$0xff]  ;;  %v3546_v5 = vld [vmem:[%s4123_s3 + $0x30] sm:$0xff] }
  0x17   :  { %2827 = vmatmul.mubr.msk.f32.gmra.mxu0 %vm96_vm0, %v67_v9  ;;  %v3555_v7 = vld [vmem:[%s4123_s3 + $0x38] sm:$0xff]  ;;  %v3572_v12 = vld [vmem:[%s4125_s5] sm:$0xff] }
  0x18   :  { %2829 = vmatprep.mubr.msk.f32.mxu0 %vm96_vm0, %v68_v10  ;;  %v3567_v10 = vld [vmem:[%s4125_s5 + $0x8] sm:$0xff] }
  0x1b   :  { %2830 = vmatmul.mubr.msk.f32.gmra.mxu0 %vm96_vm0, %v69_v11 }
  0xcf   :  { %v2822_v14 = vpop.f32.mrf.mxu0 }
  0xd1   :  { %v187_v15 = vpop.f32.mrf.mxu0 }
  0xd2   :  { %2840 = vmatprep.mubr.msk.f32.mxu1 %vm237_vm1, %v187_v15  ;;  %v3578_v15 = vld [vmem:[%s4125_s5 + $0x18] sm:$0xff] }
  0xd3   :  { %v2825_v16 = vpop.f32.mrf.mxu0  ;;  %2841 = vmatmul.mubr.msk.f32.vlgmr.msra.gmra.mxu1 %vm237_vm1, %v2822_v14 }
  0xd5   :  { %v197_v17 = vpop.f32.mrf.mxu0 }
  0xd6   :  { %2843 = vmatprep.mubr.msk.f32.mxu1 %vm237_vm1, %v197_v17 }
  0xd7   :  { %v2828_v18 = vpop.f32.mrf.mxu0  ;;  %2844 = vmatmul.mubr.msk.f32.gmra.mxu1 %vm237_vm1, %v2825_v16 }
  0xd9   :  { %v207_v19 = vpop.f32.mrf.mxu0 }
  0xda   :  { %2846 = vmatprep.mubr.msk.f32.mxu1 %vm237_vm1, %v207_v19 }
  0xdb   :  { %v2831_v20 = vpop.f32.mrf.mxu0  ;;  %2847 = vmatmul.mubr.msk.f32.gmra.mxu1 %vm237_vm1, %v2828_v18 }
  0xdd   :  { %v217_v21 = vpop.f32.mrf.mxu0 }
  0xde   :  { %2849 = vmatprep.mubr.msk.f32.mxu1 %vm237_vm1, %v217_v21 }
  0xdf   :  { %2850 = vmatmul.mubr.msk.f32.gmra.mxu1 %vm237_vm1, %v2831_v20 }
 0x193   :  { %v2842_v22 = vpop.f32.mrf.mxu1 }
 0x194   :  { %v3459_v41 = vadd.f32 %v2842_v22, %v2512_v23  ;;  %v3589_v22 = vld [vmem:[%s4125_s5 + $0x10] sm:$0xff] }
 0x195   :  { %v328_v25 = vpop.f32.mrf.mxu1 }
 0x196   :  { %v3426_v26 = vadd.f32 %v2512_v23, %v328_v25  ;;  %v368_v59 = vmul.f32 %v3459_v41, %v3510_v57 }
 0x197   :  { %v2845_v27 = vpop.f32.mrf.mxu1 }
 0x198   :  { %v367_v28 = vmul.f32 %v3426_v26, %v72_v24  ;;  %v3450_v39 = vadd.f32 %v2845_v27, %v2512_v23  ;;  %v3597_v27 = vld [vmem:[%s4125_s5 + $0x28] sm:$0xff] }
 0x199   :  { %v338_v29 = vpop.f32.mrf.mxu1 }
 0x19a   :  { %2868 = vmatprep.mubr.msk.f32.mxu0 %vm237_vm1, %v367_v28  ;;  %v3442_v37 = vadd.f32 %v2512_v23, %v338_v29  ;;  %v370_v63 = vmul.f32 %v3450_v39, %v3523_v60 }
 0x19b   :  { %v2848_v30 = vpop.f32.mrf.mxu1 }
 0x19c   :  { %v3430_v31 = vadd.f32 %v2848_v30, %v2512_v23  ;;  %v369_v61 = vmul.f32 %v3442_v37, %v3515_v58 }
 0x19d   :  { %v348_v32 = vpop.f32.mrf.mxu1 }
 0x19e   :  { %433 = vrot.lane.b32.xlu1 %v3430_v31, %s3251_s19  ;;  %v3434_v34 = vadd.f32 %v2512_v23, %v348_v32  ;;  %v372_v6 = vmul.f32 %v3430_v31, %v3539_v3  ;;  %v3604_v32 = vld [vmem:[%s4125_s5 + $0x38] sm:$0xff] }
 0x19f   :  { %v2851_v33 = vpop.f32.mrf.mxu1 }
 0x1a0   :  { %v3436_v35 = vadd.f32 %v2851_v33, %v2512_v23  ;;  %v371_v4 = vmul.f32 %v3434_v34, %v3530_v62 }
 0x1a1   :  { %v358_v36 = vpop.f32.mrf.mxu1 }
 0x1a2   :  { %431 = vrot.lane.b32.xlu1 %v3434_v34, %s3251_s19  ;;  %437 = vrot.lane.b32.xlu0 %v3436_v35, %s3251_s19  ;;  %v3444_v38 = vadd.f32 %v2512_v23, %v358_v36  ;;  %v374_v9 = vmul.f32 %v3436_v35, %v3555_v7 }
 0x1a4   :  { %v373_v8 = vmul.f32 %v3444_v38, %v3546_v5 }
 0x1a6   :  { %427 = vrot.lane.b32.xlu1 %v3442_v37, %s3251_s19  ;;  %435 = vrot.lane.b32.xlu0 %v3444_v38, %s3251_s19 }
 0x1aa   :  { %423 = vrot.lane.b32.xlu1 %v3426_v26, %s3251_s19  ;;  %429 = vrot.lane.b32.xlu0 %v3450_v39, %s3251_s19 }
 0x1ae   :  { %397 = vrot.lane.b32.xlu1 %v87_v40, %s3252_s22  ;;  %425 = vrot.lane.b32.xlu0 %v3459_v41, %s3251_s19 }
 0x1b2   :  { %393 = vrot.lane.b32.xlu1 %v85_v42, %s3252_s22  ;;  %395 = vrot.lane.b32.xlu0 %v86_v43, %s3252_s22 }
 0x1b6   :  { %391 = vrot.lane.b32.xlu1 %v84_v44, %s3252_s22  ;;  %389 = vrot.lane.b32.xlu0 %v83_v45, %s3252_s22 }
 0x1ba   :  { %387 = vrot.lane.b32.xlu1 %v82_v46, %s3252_s22  ;;  %385 = vrot.lane.b32.xlu0 %v81_v47, %s3252_s22 }
 0x1be   :  { %383 = vrot.lane.b32.xlu1 %v80_v48, %s3252_s22 }
 0x210   :  { %v434_v50 = vpop.permute.xlu1 %433 }
 0x214   :  { %v438_v49 = vpop.permute.xlu0 %437  ;;  %v432_v52 = vpop.permute.xlu1 %431 }
 0x215   :  { %2852 = vmatprep.subr.msk.mxu0 %vm237_vm1, %v438_v49 }
 0x216   :  { %2853 = vmatpush3.xpose.msk.msra.mxu0 %vm237_vm1, %v438_v49 }
 0x218   :  { %v436_v51 = vpop.permute.xlu0 %435  ;;  %v428_v54 = vpop.permute.xlu1 %427 }
 0x219   :  { %2854 = vmatprep.subr.msk.mxu0 %vm237_vm1, %v436_v51 }
 0x21a   :  { %2855 = vmatpush3.xpose.msk.msra.mxu0 %vm237_vm1, %v436_v51 }
 0x21b   :  { %2856 = vmatprep.subr.msk.mxu0 %vm237_vm1, %v434_v50 }
 0x21c   :  { %v430_v53 = vpop.permute.xlu0 %429  ;;  %v424_v56 = vpop.permute.xlu1 %423 }
 0x21e   :  { %2857 = vmatpush3.xpose.msk.msra.mxu0 %vm237_vm1, %v434_v50 }
 0x21f   :  { %2858 = vmatprep.subr.msk.mxu0 %vm237_vm1, %v432_v52 }
 0x220   :  { %v426_v55 = vpop.permute.xlu0 %425  ;;  %v3606_v36 = vpop.permute.xlu1 %397 }
 0x221   :  { %v414_v43 = vmul.f32 %v3606_v36, %v3436_v35  ;;  %v3627_v35 = vld [vmem:[%s4125_s5 + $0x20] sm:$0xff] }
 0x222   :  { %2859 = vmatpush3.xpose.msk.msra.mxu0 %vm237_vm1, %v432_v52 }
 0x223   :  { %2860 = vmatprep.subr.msk.mxu0 %vm237_vm1, %v430_v53 }
 0x224   :  { %v3614_v45 = vpop.permute.xlu0 %395 }
 0x225   :  { %v413_v46 = vmul.f32 %v3614_v45, %v3444_v38  ;;  %v3635_v38 = vld [vmem:[%s4125_s5 + $0x30] sm:$0xff] }
 0x226   :  { %2861 = vmatpush3.xpose.msk.msra.mxu0 %vm237_vm1, %v430_v53  ;;  %v3644_v53 = vpop.permute.xlu1 %393 }
 0x227   :  { %2862 = vmatprep.subr.msk.mxu0 %vm237_vm1, %v428_v54 }
 0x228   :  { %v3618_v47 = vpop.permute.xlu0 %389 }
 0x229   :  { %v410_v48 = vmul.f32 %v3618_v47, %v3450_v39 }
 0x22a   :  { %2863 = vmatpush3.xpose.msk.msra.mxu0 %vm237_vm1, %v428_v54  ;;  %v3646_v54 = vpop.permute.xlu1 %391 }
 0x22b   :  { %2864 = vmatprep.subr.msk.mxu0 %vm237_vm1, %v426_v55 }
 0x22e   :  { %2865 = vmatpush3.xpose.msk.msra.mxu0 %vm237_vm1, %v426_v55  ;;  %v412_v55 = vmul.f32 %v3644_v53, %v3430_v31 }
 0x22f   :  { %2866 = vmatprep.subr.msk.mxu0 %vm237_vm1, %v424_v56 }
 0x232   :  { %2867 = vmatpush3.xpose.msk.msra.mxu0 %vm237_vm1, %v424_v56  ;;  %v411_v56 = vmul.f32 %v3646_v54, %v3434_v34 }
 0x235   :  { %2869 = vmatmul.mubr.msk.f32.vlgmr.msra.gmra.mxu0 %vm237_vm1, %v368_v59  ;;  %v3653_v59 = vpop.permute.xlu1 %387 }
 0x236   :  { %2871 = vmatprep.mubr.msk.f32.mxu0 %vm237_vm1, %v369_v61  ;;  %v409_v61 = vmul.f32 %v3653_v59, %v3442_v37 }
 0x239   :  { %2872 = vmatmul.mubr.msk.f32.gmra.mxu0 %vm237_vm1, %v370_v63  ;;  %v3659_v63 = vpop.permute.xlu1 %383 }
 0x23a   :  { %2874 = vmatprep.mubr.msk.f32.mxu0 %vm237_vm1, %v371_v4  ;;  %v3661_v4 = vpop.permute.xlu0 %385 }
 0x23d   :  { %2875 = vmatmul.mubr.msk.f32.gmra.mxu0 %vm237_vm1, %v372_v6 }
 0x23e   :  { %2877 = vmatprep.mubr.msk.f32.mxu0 %vm237_vm1, %v373_v8 }
 0x241   :  { %2878 = vmatmul.mubr.msk.f32.gmra.mxu0 %vm237_vm1, %v374_v9 }
 0x2f5   :  { %v2870_v11 = vpop.f32.mrf.mxu0 }
 0x2f6   :  { %v551_v13 = vadd.f32 %v2870_v11, %v3567_v10 }
 0x2f7   :  { %v545_v14 = vpop.f32.mrf.mxu0 }
 0x2f8   :  { %v546_v16 = vadd.f32 %v545_v14, %v3572_v12  ;;  %v588_v17 = vsel %vm584_vm2, %v551_v13, -inf }
 0x2f9   :  { %589 = vmax.xlane.f32.xlu1 %v588_v17  ;;  %v2873_v18 = vpop.f32.mrf.mxu0 }
 0x2fa   :  { %v3583_v19 = vadd.f32 %v2873_v18, %v3578_v15  ;;  %v585_v20 = vsel %vm584_vm2, %v546_v16, -inf }
 0x2fb   :  { %v555_v21 = vpop.f32.mrf.mxu0  ;;  %586 = vmax.xlane.f32.xlu0 %v585_v20 }
 0x2fc   :  { %v556_v24 = vadd.f32 %v555_v21, %v3589_v22  ;;  %v594_v25 = vsel %vm584_vm2, %v3583_v19, -inf }
 0x2fd   :  { %v2876_v23 = vpop.f32.mrf.mxu0 }
 0x2fe   :  { %v571_v29 = vadd.f32 %v2876_v23, %v3597_v27  ;;  %v591_v30 = vsel %vm584_vm2, %v556_v24, -inf }
 0x2ff   :  { %v565_v28 = vpop.f32.mrf.mxu0  ;;  %595 = vmax.xlane.f32.xlu0 %v594_v25 }
 0x300   :  { %v600_v42 = vsel %vm584_vm2, %v571_v29, -inf  ;;  %v3630_v49 = vadd.f32 %v565_v28, %v3627_v35 }
 0x301   :  { %v2879_v33 = vpop.f32.mrf.mxu0 }
 0x302   :  { %v581_v40 = vadd.f32 %v2879_v33, %v3604_v32  ;;  %v597_v39 = vsel %vm584_vm2, %v3630_v49, -inf }
 0x303   :  { %592 = vmax.xlane.f32.xlu0 %v591_v30  ;;  %v575_v50 = vpop.f32.mrf.mxu0 }
 0x304   :  { %v606_v44 = vsel %vm584_vm2, %v581_v40, -inf  ;;  %v3638_v51 = vadd.f32 %v575_v50, %v3635_v38 }
 0x306   :  { %v603_v52 = vsel %vm584_vm2, %v3638_v51, -inf }
 0x307   :  { %601 = vmax.xlane.f32.xlu0 %v600_v42 }
 0x30a   :  { %695 = vrot.lane.b32.xlu1 %v414_v43, %s3252_s22 }
 0x30b   :  { %607 = vmax.xlane.f32.xlu0 %v606_v44 }
 0x321   :  { %693 = vrot.lane.b32.xlu0 %v413_v46, %s3252_s22 }
 0x325   :  { %687 = vrot.lane.b32.xlu0 %v410_v48, %s3252_s22 }
 0x32e   :  { %598 = vmax.xlane.f32.xlu1 %v597_v39 }
 0x332   :  { %604 = vmax.xlane.f32.xlu1 %v603_v52 }
 0x343   :  { %691 = vrot.lane.b32.xlu1 %v412_v55, %s3252_s22 }
 0x347   :  { %689 = vrot.lane.b32.xlu1 %v411_v56, %s3252_s22 }
 0x34b   :  { %685 = vrot.lane.b32.xlu1 %v409_v61, %s3252_s22 }
 0x382   :  { %v590_v6 = vpop.xlane.xlu1 %589 }
 0x383   :  { %v610_v31 = vsub.f32 %v551_v13, %v590_v6 }
 0x384   :  { %v587_v8 = vpop.xlane.xlu0 %586 }
 0x385   :  { %v619_v9 = vmul.f32 1.442695, %v610_v31  ;;  %v609_v11 = vsub.f32 %v546_v16, %v587_v8  ;;  %v408_v8 = vmul.f32 %v3661_v4, %v3459_v41 }
 0x386   :  { %v696_v14 = vpop.permute.xlu1 %695 }
 0x387   :  { %3125 = vpow2.f32 %v619_v9  ;;  %v617_v34 = vmul.f32 1.442695, %v609_v11  ;;  %2880 = vmatprep.subr.mxu1 %v696_v14 }
 0x388   :  { %2881 = vmatpush3.msra.mxu1 %v696_v14  ;;  %v596_v17 = vpop.xlane.xlu0 %595 }
 0x389   :  { %3127 = vpow2.f32 %v617_v34  ;;  %v612_v37 = vsub.f32 %v3583_v19, %v596_v17 }
 0x38b   :  { %v623_v18 = vmul.f32 1.442695, %v612_v37 }
 0x38c   :  { %v593_v20 = vpop.xlane.xlu0 %592 }
 0x38d   :  { %3129 = vpow2.f32 %v623_v18  ;;  %v611_v21 = vsub.f32 %v556_v24, %v593_v20  ;;  %v407_v20 = vmul.f32 %v3659_v63, %v3426_v26 }
 0x38f   :  { %v621_v23 = vmul.f32 1.442695, %v611_v21 }
 0x390   :  { %v602_v25 = vpop.xlane.xlu0 %601 }
 0x391   :  { %3131 = vpow2.f32 %v621_v23  ;;  %v614_v13 = vsub.f32 %v571_v29, %v602_v25 }
 0x393   :  { %v627_v28 = vmul.f32 1.442695, %v614_v13 }
 0x394   :  { %v3664_v30 = vpop.eup %3125  ;;  %v608_v16 = vpop.xlane.xlu0 %607 }
 0x395   :  { %3133 = vpow2.f32 %v627_v28  ;;  %v616_v33 = vsub.f32 %v581_v40, %v608_v16  ;;  %v636_v42 = vsel %vm584_vm2, %v3664_v30, 0.0 }
 0x396   :  { %v3128_v43 = vpop.eup %3127  ;;  %637 = vadd.xlane.f32.xlu1 %v636_v42 }
 0x397   :  { %v631_v19 = vmul.f32 1.442695, %v616_v33  ;;  %v633_v44 = vsel %vm584_vm2, %v3128_v43, 0.0 }
 0x398   :  { %634 = vadd.xlane.f32.xlu0 %v633_v44  ;;  %v694_v24 = vpop.permute.xlu0 %693 }
 0x399   :  { %3135 = vpow2.f32 %v631_v19  ;;  %2882 = vmatprep.subr.mxu1 %v694_v24 }
 0x39a   :  { %v3669_v46 = vpop.eup %3129  ;;  %2883 = vmatpush3.msra.mxu1 %v694_v24 }
 0x39b   :  { %v642_v29 = vsel %vm584_vm2, %v3669_v46, 0.0 }
 0x39c   :  { %643 = vadd.xlane.f32.xlu0 %v642_v29  ;;  %v688_v17 = vpop.permute.xlu0 %687 }
 0x39e   :  { %v3673_v40 = vpop.eup %3131 }
 0x39f   :  { %v639_v48 = vsel %vm584_vm2, %v3673_v40, 0.0 }
 0x3a0   :  { %640 = vadd.xlane.f32.xlu0 %v639_v48 }
 0x3a2   :  { %v3677_v50 = vpop.eup %3133 }
 0x3a3   :  { %v648_v39 = vsel %vm584_vm2, %v3677_v50, 0.0 }
 0x3a4   :  { %649 = vadd.xlane.f32.xlu0 %v648_v39 }
 0x3a6   :  { %v3681_v52 = vpop.eup %3135 }
 0x3a7   :  { %v654_v55 = vsel %vm584_vm2, %v3681_v52, 0.0 }
 0x3a8   :  { %655 = vadd.xlane.f32.xlu0 %v654_v55 }
 0x3b7   :  { %v599_v56 = vpop.xlane.xlu1 %598 }
 0x3b8   :  { %v613_v61 = vsub.f32 %v3630_v49, %v599_v56 }
 0x3ba   :  { %v625_v6 = vmul.f32 1.442695, %v613_v61 }
 0x3bb   :  { %v605_v31 = vpop.xlane.xlu1 %604 }
 0x3bc   :  { %3137 = vpow2.f32 %v625_v6  ;;  %v615_v9 = vsub.f32 %v3638_v51, %v605_v31 }
 0x3be   :  { %v629_v11 = vmul.f32 1.442695, %v615_v9  ;;  %683 = vrot.lane.b32.xlu0 %v408_v8, %s3252_s22 }
 0x3bf   :  { %v692_v14 = vpop.permute.xlu1 %691 }
 0x3c0   :  { %3139 = vpow2.f32 %v629_v11  ;;  %2884 = vmatprep.subr.mxu1 %v692_v14 }
 0x3c1   :  { %2885 = vmatpush3.msra.mxu1 %v692_v14 }
 0x3c3   :  { %v690_v34 = vpop.permute.xlu1 %689 }
 0x3c4   :  { %2886 = vmatprep.subr.mxu1 %v690_v34 }
 0x3c5   :  { %2887 = vmatpush3.msra.mxu1 %v690_v34 }
 0x3c6   :  { %2888 = vmatprep.subr.mxu1 %v688_v17 }
 0x3c7   :  { %2889 = vmatpush3.msra.mxu1 %v688_v17  ;;  %v686_v49 = vpop.permute.xlu1 %685 }
 0x3c8   :  { %2890 = vmatprep.subr.mxu1 %v686_v49 }
 0x3c9   :  { %v3138_v37 = vpop.eup %3137  ;;  %2891 = vmatpush3.msra.mxu1 %v686_v49 }
 0x3ca   :  { %v645_v41 = vsel %vm584_vm2, %v3138_v37, 0.0 }
 0x3cb   :  { %646 = vadd.xlane.f32.xlu1 %v645_v41 }
 0x3cd   :  { %v3140_v51 = vpop.eup %3139 }
 0x3ce   :  { %v651_v18 = vsel %vm584_vm2, %v3140_v51, 0.0 }
 0x3cf   :  { %652 = vadd.xlane.f32.xlu1 %v651_v18  ;;  %v918_v18 = vld [vmem:[%s4128_s8 + $0x18] sm:$0xff] }
 0x3e0   :  { %681 = vrot.lane.b32.xlu1 %v407_v20, %s3252_s22  ;;  %v917_v20 = vld [vmem:[%s4128_s8 + $0x10] sm:$0xff] }
 0x41f   :  { %v638_v19 = vpop.xlane.xlu1 %637 }
 0x421   :  { %v635_v21 = vpop.xlane.xlu0 %634 }
 0x422   :  { %3141 = vrcp.f32 %v635_v21  ;;  %v916_v21 = vld [vmem:[%s4128_s8 + $0x8] sm:$0xff] }
 0x423   :  { %3143 = vrcp.f32 %v638_v19 }
 0x425   :  { %v644_v23 = vpop.xlane.xlu0 %643 }
 0x429   :  { %v641_v25 = vpop.xlane.xlu0 %640 }
 0x42a   :  { %3145 = vrcp.f32 %v641_v25 }
 0x42b   :  { %3147 = vrcp.f32 %v644_v23  ;;  %v915_v23 = vld [vmem:[%s4128_s8] sm:$0xff] }
 0x42d   :  { %v650_v13 = vpop.xlane.xlu0 %649 }
 0x42e   :  { %3149 = vrcp.f32 %v650_v13 }
 0x42f   :  { %v3142_v28 = vpop.eup %3141 }
 0x430   :  { %v658_v16 = vmul.f32 %v3142_v28, %v3128_v43  ;;  %v3144_v24 = vpop.eup %3143  ;;  %v2547_v28 = vld [vmem:[%s4129_s9] ss:$0 sm:$0xff] }
 0x431   :  { %v656_v33 = vpop.xlane.xlu0 %655  ;;  %v660_v43 = vmul.f32 %v3144_v24, %v3664_v30 }
 0x432   :  { %2896 = vmatprep.mubr.msk.f32.mxu1 %vm584_vm2, %v658_v16 }
 0x435   :  { %v684_v42 = vpop.permute.xlu0 %683 }
 0x436   :  { %2892 = vmatprep.subr.mxu1 %v684_v42 }
 0x437   :  { %2893 = vmatpush3.msra.mxu1 %v684_v42  ;;  %v3146_v29 = vpop.eup %3145 }
 0x438   :  { %v3148_v39 = vpop.eup %3147  ;;  %v662_v55 = vmul.f32 %v3146_v29, %v3673_v40 }
 0x439   :  { %v664_v61 = vmul.f32 %v3148_v39, %v3669_v46  ;;  %v3711_v46 = vld [vmem:[%s4147_s28] sm:$0xff] }
 0x43b   :  { %v3150_v56 = vpop.eup %3149 }
 0x43c   :  { %v668_v30 = vmul.f32 %v3150_v56, %v3677_v50 }
 0x454   :  { %v647_v26 = vpop.xlane.xlu1 %646 }
 0x455   :  { %3151 = vrcp.f32 %v647_v26 }
 0x456   :  { %3153 = vrcp.f32 %v656_v33 }
 0x458   :  { %v653_v44 = vpop.xlane.xlu1 %652 }
 0x459   :  { %3155 = vrcp.f32 %v653_v44 }
 0x45c   :  { %v682_v48 = vpop.permute.xlu1 %681 }
 0x45d   :  { %2894 = vmatprep.subr.mxu1 %v682_v48 }
 0x45e   :  { %2895 = vmatpush3.msra.mxu1 %v682_v48 }
 0x45f   :  { %2897 = vmatmul.mubr.msk.f32.vlgmr.msra.gmra.mxu1 %vm584_vm2, %v660_v43 }
 0x460   :  { %2899 = vmatprep.mubr.msk.f32.mxu1 %vm584_vm2, %v662_v55 }
 0x462   :  { %v3152_v6 = vpop.eup %3151 }
 0x463   :  { %2900 = vmatmul.mubr.msk.f32.gmra.mxu1 %vm584_vm2, %v664_v61  ;;  %v666_v31 = vmul.f32 %v3152_v6, %v3138_v37  ;;  %v3154_v8 = vpop.eup %3153 }
 0x464   :  { %v672_v11 = vmul.f32 %v3154_v8, %v3681_v52  ;;  %v3718_v52 = vld [vmem:[%s4147_s28 + $0x8] sm:$0xff] }
 0x465   :  { %2902 = vmatprep.mubr.msk.f32.mxu1 %vm584_vm2, %v666_v31 }
 0x466   :  { %v3156_v9 = vpop.eup %3155 }
 0x467   :  { %2903 = vmatmul.mubr.msk.f32.gmra.mxu1 %vm584_vm2, %v668_v30  ;;  %v670_v40 = vmul.f32 %v3156_v9, %v3140_v51  ;;  %v1070_v30 = vld [vmem:[%s4132_s12 + $0x10] sm:$0xff]  ;;  %v1069_v9 = vld [vmem:[%s4132_s12 + $0x8] sm:$0xff] }
 0x469   :  { %2905 = vmatprep.mubr.msk.f32.mxu1 %vm584_vm2, %v670_v40  ;;  %v1068_v40 = vld [vmem:[%s4132_s12] sm:$0xff] }
 0x46b   :  { %2906 = vmatmul.mubr.msk.f32.gmra.mxu1 %vm584_vm2, %v672_v11  ;;  %v1169_v11 = vld [vmem:[%s4134_s14 + $0x38] sm:$0xff] }
 0x46c   :  { %2924 = vmatprep.mubr.msk.f32.mxu1 %vm584_vm2, %v3711_v46 }
 0x51f   :  { %v2898_v14 = vpop.f32.mrf.mxu1 }
 0x521   :  { %v795_v50 = vpop.f32.mrf.mxu1 }
 0x523   :  { %v2901_v34 = vpop.f32.mrf.mxu1 }
 0x525   :  { %v805_v17 = vpop.f32.mrf.mxu1 }
 0x527   :  { %v2904_v49 = vpop.f32.mrf.mxu1 }
 0x529   :  { %v815_v37 = vpop.f32.mrf.mxu1 }
 0x52b   :  { %v2907_v41 = vpop.f32.mrf.mxu1 }
 0x52c   :  { %2908 = vmatprep.subr.mxu1 %v2907_v41 }
 0x52d   :  { %v825_v51 = vpop.f32.mrf.mxu1  ;;  %2909 = vmatpush3.msra.mxu1 %v2907_v41 }
 0x52e   :  { %2910 = vmatprep.subr.mxu1 %v825_v51 }
 0x52f   :  { %2911 = vmatpush3.msra.mxu1 %v825_v51 }
 0x530   :  { %2912 = vmatprep.subr.mxu1 %v2904_v49 }
 0x531   :  { %2913 = vmatpush3.msra.mxu1 %v2904_v49 }
 0x532   :  { %2914 = vmatprep.subr.mxu1 %v815_v37 }
 0x533   :  { %2915 = vmatpush3.msra.mxu1 %v815_v37 }
 0x534   :  { %2916 = vmatprep.subr.mxu1 %v2901_v34 }
 0x535   :  { %2917 = vmatpush3.msra.mxu1 %v2901_v34  ;;  %v1166_v34 = vld [vmem:[%s4134_s14 + $0x20] sm:$0xff] }
 0x536   :  { %2918 = vmatprep.subr.mxu1 %v805_v17 }
 0x537   :  { %2919 = vmatpush3.msra.mxu1 %v805_v17 }
 0x538   :  { %2920 = vmatprep.subr.mxu1 %v2898_v14 }
 0x539   :  { %2921 = vmatpush3.msra.mxu1 %v2898_v14  ;;  %v1168_v14 = vld [vmem:[%s4134_s14 + $0x30] sm:$0xff] }
 0x53a   :  { %2922 = vmatprep.subr.mxu1 %v795_v50 }
 0x53b   :  { %2923 = vmatpush3.msra.mxu1 %v795_v50  ;;  %v1167_v50 = vld [vmem:[%s4134_s14 + $0x28] sm:$0xff] }
 0x53c   :  { %2925 = vmatmul.mubr.msk.f32.vlgmr.msra.gmra.mxu1 %vm584_vm2, %v3718_v52  ;;  %2927 = vmatprep.subr.mxu1 %v918_v18 }
 0x53d   :  { %2928 = vmatpush3.msra.mxu1 %v918_v18 }
 0x53e   :  { %2929 = vmatprep.subr.mxu1 %v917_v20 }
 0x53f   :  { %2930 = vmatpush3.msra.mxu1 %v917_v20 }
 0x540   :  { %2931 = vmatprep.subr.mxu1 %v916_v21 }
 0x541   :  { %2932 = vmatpush3.msra.mxu1 %v916_v21 }
 0x542   :  { %2933 = vmatprep.subr.mxu1 %v915_v23 }
 0x543   :  { %2934 = vmatpush3.msra.mxu1 %v915_v23 }
 0x544   :  { %2949 = vmatprep.subr.mxu1 %v1169_v11 }
 0x5fc   :  { %v2926_v25 = vpop.f32.mrf.mxu1 }
 0x5fe   :  { %v906_v13 = vpop.f32.mrf.mxu1 }
 0x5ff   :  { %2935 = vmatprep.mubr.msk.f32.mxu1 %vm237_vm1, %v906_v13 }
 0x600   :  { %2936 = vmatmul.mubr.msk.f32.vlgmr.msra.gmra.mxu1 %vm237_vm1, %v2926_v25 }
 0x601   :  { %2950 = vmatpush3.msra.mxu1 %v1169_v11 }
 0x602   :  { %2951 = vmatprep.subr.mxu1 %v1168_v14 }
 0x603   :  { %2952 = vmatpush3.msra.mxu1 %v1168_v14 }
 0x604   :  { %2953 = vmatprep.subr.mxu1 %v1167_v50 }
 0x605   :  { %2954 = vmatpush3.msra.mxu1 %v1167_v50 }
 0x606   :  { %2955 = vmatprep.subr.mxu1 %v1166_v34 }
 0x607   :  { %2956 = vmatpush3.msra.mxu1 %v1166_v34  ;;  %v2555_v34 = vld [vmem:[%s4135_s15] ss:$0 sm:$0xff] }
 0x6c0   :  { %v2937_v16 = vpop.f32.mrf.mxu1 }
 0x6c1   :  { %v1004_v33 = vadd.f32 %v2937_v16, %v2547_v28 }
 0x6c2   :  { %v998_v42 = vpop.f32.mrf.mxu1 }
 0x6c3   :  { %v999_v19 = vadd.f32 %v2547_v28, %v998_v42  ;;  %v1008_v26 = vadd.f32 %v1004_v33, %v3354_v0 }
 0x6c5   :  { %v1014_v44 = vsel %vm237_vm1, %v1008_v26, 0.0  ;;  %v1007_v24 = vadd.f32 %v999_v19, %v3359_v1  ;;  %v1071_v1 = vld [vmem:[%s4132_s12 + $0x18] sm:$0xff] }
 0x6c6   :  { %1015 = vadd.xlane.f32.xlu1 %v1014_v44  ;;  %2938 = vmatprep.subr.mxu0 %v1071_v1  ;;  %v2550_v44 = vld [vmem:[%s4130_s10] ss:$0 sm:$0xff] }
 0x6c7   :  { %v1011_v29 = vsel %vm237_vm1, %v1007_v24, 0.0  ;;  %2939 = vmatpush3.msra.mxu0 %v1071_v1  ;;  %v2552_v1 = vld [vmem:[%s4133_s13] ss:$0 sm:$0xff] }
 0x6c8   :  { %1012 = vadd.xlane.f32.xlu0 %v1011_v29  ;;  %2940 = vmatprep.subr.mxu0 %v1070_v30  ;;  %v2551_v29 = vld [vmem:[%s4131_s11] ss:$0 sm:$0xff] }
 0x6c9   :  { %2941 = vmatpush3.msra.mxu0 %v1070_v30 }
 0x6ca   :  { %2942 = vmatprep.subr.mxu0 %v1069_v9 }
 0x6cb   :  { %2943 = vmatpush3.msra.mxu0 %v1069_v9 }
 0x6cc   :  { %2944 = vmatprep.subr.mxu0 %v1068_v40 }
 0x6cd   :  { %2945 = vmatpush3.msra.mxu0 %v1068_v40 }
 0x74f   :  { %v1016_v48 = vpop.xlane.xlu1 %1015 }
 0x750   :  { %v1019_v43 = vmul.f32 0.03125, %v1016_v48 }
 0x751   :  { %v1013_v39 = vpop.xlane.xlu0 %1012 }
 0x752   :  { %v1018_v55 = vmul.f32 0.03125, %v1013_v39  ;;  %v1021_v56 = vsub.f32 %v1008_v26, %v1019_v43 }
 0x754   :  { %v1020_v61 = vsub.f32 %v1007_v24, %v1018_v55  ;;  %v1023_v8 = vmul.f32 %v1021_v56, %v1021_v56 }
 0x756   :  { %v1022_v6 = vmul.f32 %v1020_v61, %v1020_v61  ;;  %v1027_v0 = vsel %vm237_vm1, %v1023_v8, 0.0  ;;  %v1165_v8 = vld [vmem:[%s4134_s14 + $0x18] sm:$0xff] }
 0x757   :  { %2957 = vmatprep.subr.mxu1 %v1165_v8 }
 0x758   :  { %v1024_v31 = vsel %vm237_vm1, %v1022_v6, 0.0  ;;  %2958 = vmatpush3.msra.mxu1 %v1165_v8 }
 0x759   :  { %1025 = vadd.xlane.f32.xlu0 %v1024_v31 }
 0x75d   :  { %1028 = vadd.xlane.f32.xlu0 %v1027_v0  ;;  %v1162_v0 = vld [vmem:[%s4134_s14] sm:$0xff] }
 0x7e2   :  { %v1026_v17 = vpop.xlane.xlu0 %1025 }
 0x7e3   :  { %v1030_v49 = vmul.f32 0.03125, %v1026_v17 }
 0x7e5   :  { %3157 = vrsqrt.f32 %v1030_v49  ;;  %vm1034_vm3 = vcmp.eq.f32.partialorder %v1030_v49, inf  ;;  %v1037_v20 = vand.u32 2147483648, %v1030_v49  ;;  %vm1036_vm4 = vcmp.eq.f32.partialorder %v1030_v49, 0.0 }
 0x7e6   :  { %v1029_v37 = vpop.xlane.xlu0 %1028 }
 0x7e7   :  { %v1031_v41 = vmul.f32 0.03125, %v1029_v37 }
 0x7e9   :  { %3159 = vrsqrt.f32 %v1031_v41  ;;  %vm1041_vm5 = vcmp.eq.f32.partialorder %v1031_v41, inf  ;;  %v1044_v16 = vand.u32 2147483648, %v1031_v41  ;;  %vm1043_vm6 = vcmp.eq.f32.partialorder %v1031_v41, 0.0 }
 0x7f2   :  { %v3158_v51 = vpop.eup %3157 }
 0x7f3   :  { %v1033_v18 = vmul.f32 %v3158_v51, %v1030_v49 }
 0x7f5   :  { %v1035_v21 = vsel %vm1034_vm3, %v1030_v49, %v1033_v18 }
 0x7f6   :  { %v3160_v23 = vpop.eup %3159  ;;  %v1038_v25 = vsel %vm1036_vm4, %v1037_v20, %v1035_v21 }
 0x7f7   :  { %v1046_v13 = vadd.f32 1e-10, %v1038_v25  ;;  %v1040_v28 = vmul.f32 %v3160_v23, %v1031_v41 }
 0x7f9   :  { %3161 = vrcp.f32 %v1046_v13  ;;  %v1042_v33 = vsel %vm1041_vm5, %v1031_v41, %v1040_v28 }
 0x7fa   :  { %v1045_v42 = vsel %vm1043_vm6, %v1044_v16, %v1042_v33 }
 0x7fb   :  { %v1047_v19 = vadd.f32 1e-10, %v1045_v42 }
 0x7fd   :  { %3163 = vrcp.f32 %v1047_v19 }
 0x806   :  { %v3162_v26 = vpop.eup %3161 }
 0x807   :  { %v1049_v24 = vmul.f32 %v3162_v26, %v1020_v61  ;;  %v1164_v61 = vld [vmem:[%s4134_s14 + $0x10] sm:$0xff] }
 0x808   :  { %2959 = vmatprep.subr.mxu1 %v1164_v61 }
 0x809   :  { %v1058_v48 = vmul.f32 %v2550_v44, %v1049_v24  ;;  %2960 = vmatpush3.msra.mxu1 %v1164_v61  ;;  %v2570_v24 = vld [vmem:[%s4126_s6 + $0x30] sm:$0xff] }
 0x80a   :  { %v3164_v43 = vpop.eup %3163 }
 0x80b   :  { %v1051_v39 = vmul.f32 %v3164_v43, %v1021_v56  ;;  %v1066_v55 = vadd.f32 %v2551_v29, %v1058_v48  ;;  %v1163_v56 = vld [vmem:[%s4134_s14 + $0x8] sm:$0xff] }
 0x80c   :  { %2961 = vmatprep.subr.mxu1 %v1163_v56 }
 0x80d   :  { %v1059_v6 = vmul.f32 %v2550_v44, %v1051_v39  ;;  %2946 = vmatprep.mubr.msk.f32.mxu0 %vm237_vm1, %v1066_v55  ;;  %2962 = vmatpush3.msra.mxu1 %v1163_v56  ;;  %v2571_v44 = vld [vmem:[%s4126_s6 + $0x38] sm:$0xff] }
 0x80e   :  { %2963 = vmatprep.subr.mxu1 %v1162_v0  ;;  %2984 = vmatprep.subr.mxu0 %v2571_v44 }
 0x80f   :  { %v1067_v31 = vadd.f32 %v2551_v29, %v1059_v6  ;;  %2964 = vmatpush3.msra.mxu1 %v1162_v0 }
 0x811   :  { %2947 = vmatmul.mubr.msk.f32.vlgmr.msra.gmra.mxu0 %vm237_vm1, %v1067_v31 }
 0x812   :  { %2985 = vmatpush3.msra.mxu0 %v2571_v44 }
 0x813   :  { %2986 = vmatprep.subr.mxu0 %v2570_v24 }
 0x814   :  { %2987 = vmatpush3.msra.mxu0 %v2570_v24 }
 0x8d1   :  { %v2948_v30 = vpop.f32.mrf.mxu0 }
 0x8d2   :  { %v1157_v9 = vadd.f32 %v2948_v30, %v2552_v1 }
 0x8d3   :  { %v1151_v40 = vpop.f32.mrf.mxu0 }
 0x8d4   :  { %v1152_v11 = vadd.f32 %v2552_v1, %v1151_v40  ;;  %v1161_v50 = vmax.f32 %v1157_v9, 0.0 }
 0x8d6   :  { %v1160_v14 = vmax.f32 %v1152_v11, 0.0 }
 0x8d8   :  { %2965 = vmatprep.mubr.msk.f32.mxu1 %vm584_vm2, %v1160_v14 }
 0x8d9   :  { %2966 = vmatmul.mubr.msk.f32.vlgmr.msra.gmra.mxu1 %vm584_vm2, %v1161_v50  ;;  %v2558_v50 = vld [vmem:[%s4136_s16] ss:$0 sm:$0xff] }
 0x8da   :  { %2972 = vmatprep.mubr.msk.f32.mxu1 %vm96_vm0, %v3364_v2 }
 0x999   :  { %v2967_v17 = vpop.f32.mrf.mxu1 }
 0x99a   :  { %v1255_v49 = vadd.f32 %v2967_v17, %v2555_v34  ;;  %v2559_v17 = vld [vmem:[%s4137_s17] ss:$0 sm:$0xff] }
 0x99b   :  { %v1249_v37 = vpop.f32.mrf.mxu1 }
 0x99c   :  { %v1250_v41 = vadd.f32 %v2555_v34, %v1249_v37  ;;  %v1259_v51 = vadd.f32 %v1255_v49, %v1067_v31 }
 0x99e   :  { %v1265_v18 = vsel %vm237_vm1, %v1259_v51, 0.0  ;;  %v1258_v20 = vadd.f32 %v1250_v41, %v1066_v55 }
 0x99f   :  { %1266 = vadd.xlane.f32.xlu1 %v1265_v18 }
 0x9a0   :  { %v1262_v21 = vsel %vm237_vm1, %v1258_v20, 0.0 }
 0x9a1   :  { %1263 = vadd.xlane.f32.xlu0 %v1262_v21  ;;  %v3221_v21 = vld [vmem:[%s4146_s20 + $0x8] sm:$0xff] }
 0xa28   :  { %v1267_v23 = vpop.xlane.xlu1 %1266 }
 0xa29   :  { %v1269_v25 = vmul.f32 0.03125, %v1267_v23  ;;  %v3222_v23 = vld [vmem:[%s4146_s20 + $0x10] sm:$0xff] }
 0xa2a   :  { %v1264_v13 = vpop.xlane.xlu0 %1263 }
 0xa2b   :  { %v1271_v2 = vsub.f32 %v1259_v51, %v1269_v25  ;;  %v1268_v28 = vmul.f32 0.03125, %v1264_v13  ;;  %v3223_v25 = vld [vmem:[%s4146_s20 + $0x18] sm:$0xff]  ;;  %v3224_v13 = vld [vmem:[%s4146_s20 + $0x20] sm:$0xff] }
 0xa2d   :  { %v1270_v16 = vsub.f32 %v1258_v20, %v1268_v28  ;;  %v1273_v33 = vmul.f32 %v1271_v2, %v1271_v2  ;;  %v3226_v28 = vld [vmem:[%s4146_s20 + $0x30] sm:$0xff] }
 0xa2f   :  { %v1277_v42 = vsel %vm237_vm1, %v1273_v33, 0.0  ;;  %v1272_v19 = vmul.f32 %v1270_v16, %v1270_v16  ;;  %v2569_v33 = vld [vmem:[%s4126_s6 + $0x28] sm:$0xff] }
 0xa30   :  { %1278 = vadd.xlane.f32.xlu1 %v1277_v42  ;;  %2988 = vmatprep.subr.mxu0 %v2569_v33  ;;  %v2568_v42 = vld [vmem:[%s4126_s6 + $0x20] sm:$0xff]  ;;  %s3253_s6 = smov [#allocation2]  }
 0xa31   :  { %v1274_v26 = vsel %vm237_vm1, %v1272_v19, 0.0  ;;  %2989 = vmatpush3.msra.mxu0 %v2569_v33 }
 0xa32   :  { %1275 = vadd.xlane.f32.xlu0 %v1274_v26  ;;  %2990 = vmatprep.subr.mxu0 %v2568_v42 }
 0xa33   :  { %2991 = vmatpush3.msra.mxu0 %v2568_v42 }
 0xab9   :  { %v1279_v29 = vpop.xlane.xlu1 %1278 }
 0xaba   :  { %v1281_v48 = vmul.f32 0.03125, %v1279_v29 }
 0xabb   :  { %v1276_v43 = vpop.xlane.xlu0 %1275 }
 0xabc   :  { %3165 = vrsqrt.f32 %v1281_v48  ;;  %v1280_v39 = vmul.f32 0.03125, %v1276_v43  ;;  %vm1291_vm7 = vcmp.eq.f32.partialorder %v1281_v48, inf  ;;  %v1294_v31 = vand.u32 2147483648, %v1281_v48 }
 0xabd   :  { %vm1293_vm8 = vcmp.eq.f32.partialorder %v1281_v48, 0.0 }
 0xabe   :  { %3167 = vrsqrt.f32 %v1280_v39  ;;  %vm1284_vm9 = vcmp.eq.f32.partialorder %v1280_v39, inf  ;;  %v1287_v30 = vand.u32 2147483648, %v1280_v39  ;;  %vm1286_vm10 = vcmp.eq.f32.partialorder %v1280_v39, 0.0 }
 0xac9   :  { %v3166_v55 = vpop.eup %3165 }
 0xaca   :  { %v1290_v6 = vmul.f32 %v3166_v55, %v1281_v48 }
 0xacb   :  { %v3168_v8 = vpop.eup %3167 }
 0xacc   :  { %v1292_v61 = vsel %vm1291_vm7, %v1281_v48, %v1290_v6  ;;  %v1283_v0 = vmul.f32 %v3168_v8, %v1280_v39  ;;  %v2573_v6 = vld [vmem:[%s4127_s7 + $0x1] ss:$0 sm:$0xff] }
 0xacd   :  { %v1295_v56 = vsel %vm1293_vm8, %v1294_v31, %v1292_v61 }
 0xace   :  { %v1297_v1 = vadd.f32 1e-10, %v1295_v56  ;;  %v1285_v9 = vsel %vm1284_vm9, %v1280_v39, %v1283_v0  ;;  %v3228_v56 = vld [vmem:[%s4123_s3] sm:$0xff] }
 0xacf   :  { %v1288_v40 = vsel %vm1286_vm10, %v1287_v30, %v1285_v9 }
 0xad0   :  { %3169 = vrcp.f32 %v1297_v1  ;;  %v1296_v11 = vadd.f32 1e-10, %v1288_v40 }
 0xad2   :  { %3171 = vrcp.f32 %v1296_v11 }
 0xadd   :  { %v3170_v14 = vpop.eup %3169 }
 0xade   :  { %v1301_v34 = vmul.f32 %v3170_v14, %v1271_v2  ;;  %v3225_v2 = vld [vmem:[%s4146_s20 + $0x28] sm:$0xff] }
 0xadf   :  { %v3172_v49 = vpop.eup %3171 }
 0xae0   :  { %v1309_v37 = vmul.f32 %v2558_v50, %v1301_v34  ;;  %v1299_v41 = vmul.f32 %v3172_v49, %v1270_v16  ;;  %v3227_v16 = vld [vmem:[%s4146_s20 + $0x38] sm:$0xff]  ;;  %s2493_s20 = sshll.u32 %s3253_s6, 4  ;;  %s2494_s20 = int_to_ptr.vmem [resolvable:$true] %s2493_s20 }
 0xae1   :  { %s3229_s29 = scalar_lea.vmem %s2494_s20, 256  ;;  %p3234_p1 = scmp.lt.s32.totalorder %s2494_s20, %s2494_s20 }
 0xae2   :  { %v3815_v51 = vadd.f32 %v2559_v17, %v1309_v37  ;;  %v1308_v18 = vmul.f32 %v2558_v50, %v1299_v41  ;;  %p3230_p0 = scmp.ne.s32.totalorder %s2494_s20, %s3229_s29  ;;  %p3235_p2 = scmp.lt.s32.totalorder %s3229_s29, %s3229_s29 }
 0xae4   :  { %2968 = vmatprep.subr.mxu1 %v3815_v51  ;;  %v3819_v20 = vadd.f32 %v2559_v17, %v1308_v18  ;;  %p3236_p3 = por %p3235_p2, %p3234_p1 }
 0xae5   :  { %2969 = vmatpush3.msra.mxu1 %v3815_v51 }
 0xae6   :  { %2970 = vmatprep.subr.mxu1 %v3819_v20  ;;  %p3237_p4 = pnand %p3236_p3, %p3230_p0 }
 0xae7   :  { %2971 = vmatpush3.msra.mxu1 %v3819_v20 }
 0xae8   :  { %2973 = vmatmul.mubr.msk.f32.vlgmr.msra.gmra.mxu1 %vm96_vm0, %v3221_v21 }
 0xae9   :  { %2975 = vmatprep.mubr.msk.f32.mxu1 %vm96_vm0, %v3222_v23 }
 0xaec   :  { %2976 = vmatmul.mubr.msk.f32.gmra.mxu1 %vm96_vm0, %v3223_v25 }
 0xaed   :  { %2978 = vmatprep.mubr.msk.f32.mxu1 %vm96_vm0, %v3224_v13 }
 0xaf0   :  { %2979 = vmatmul.mubr.msk.f32.gmra.mxu1 %vm96_vm0, %v3225_v2 }
 0xaf1   :  { %2981 = vmatprep.mubr.msk.f32.mxu1 %vm96_vm0, %v3226_v28 }
 0xaf4   :  { %2982 = vmatmul.mubr.msk.f32.gmra.mxu1 %vm96_vm0, %v3227_v16 }
 0xba8   :  { %v2974_v19 = vpop.f32.mrf.mxu1 }
 0xbaa   :  { %v1384_v26 = vpop.f32.mrf.mxu1 }
 0xbab   :  { %2992 = vmatprep.mubr.msk.f32.mxu0 %vm237_vm1, %v1384_v26 }
 0xbac   :  { %v2977_v44 = vpop.f32.mrf.mxu1  ;;  %2993 = vmatmul.mubr.msk.f32.vlgmr.msra.gmra.mxu0 %vm237_vm1, %v2974_v19 }
 0xbae   :  { %v1394_v24 = vpop.f32.mrf.mxu1 }
 0xbaf   :  { %2995 = vmatprep.mubr.msk.f32.mxu0 %vm237_vm1, %v1394_v24 }
 0xbb0   :  { %v2980_v29 = vpop.f32.mrf.mxu1  ;;  %2996 = vmatmul.mubr.msk.f32.gmra.mxu0 %vm237_vm1, %v2977_v44 }
 0xbb2   :  { %v1404_v48 = vpop.f32.mrf.mxu1 }
 0xbb3   :  { %2998 = vmatprep.mubr.msk.f32.mxu0 %vm237_vm1, %v1404_v48 }
 0xbb4   :  { %v2983_v43 = vpop.f32.mrf.mxu1  ;;  %2999 = vmatmul.mubr.msk.f32.gmra.mxu0 %vm237_vm1, %v2980_v29 }
 0xbb6   :  { %v1414_v39 = vpop.f32.mrf.mxu1 }
 0xbb7   :  { %3001 = vmatprep.mubr.msk.f32.mxu0 %vm237_vm1, %v1414_v39 }
 0xbb8   :  { %3002 = vmatmul.mubr.msk.f32.gmra.mxu0 %vm237_vm1, %v2983_v43 }
 0xc6c   :  { %v2994_v55 = vpop.f32.mrf.mxu0 }
 0xc6d   :  { %v3893_v37 = vadd.f32 %v2994_v55, %v2573_v6 }
 0xc6e   :  { %v1526_v31 = vpop.f32.mrf.mxu0 }
 0xc6f   :  { %v3868_v8 = vadd.f32 %v2573_v6, %v1526_v31  ;;  %v1566_v33 = vmul.f32 %v3893_v37, %v3510_v57 }
 0xc70   :  { %v2997_v61 = vpop.f32.mrf.mxu0 }
 0xc71   :  { %v1565_v0 = vmul.f32 %v3228_v56, %v3868_v8  ;;  %v3885_v17 = vadd.f32 %v2997_v61, %v2573_v6 }
 0xc72   :  { %v1536_v1 = vpop.f32.mrf.mxu0 }
 0xc73   :  { %3020 = vmatprep.mubr.msk.f32.mxu1 %vm237_vm1, %v1565_v0  ;;  %v3897_v41 = vadd.f32 %v2573_v6, %v1536_v1  ;;  %v1568_v19 = vmul.f32 %v3885_v17, %v3523_v60 }
 0xc74   :  { %v3000_v30 = vpop.f32.mrf.mxu0 }
 0xc75   :  { %v3881_v34 = vadd.f32 %v3000_v30, %v2573_v6  ;;  %v1567_v42 = vmul.f32 %v3897_v41, %v3515_v58 }
 0xc76   :  { %v1546_v9 = vpop.f32.mrf.mxu0 }
 0xc77   :  { %v3889_v49 = vadd.f32 %v2573_v6, %v1546_v9  ;;  %v1570_v57 = vmul.f32 %v3881_v34, %v3539_v3 }
 0xc78   :  { %v3003_v40 = vpop.f32.mrf.mxu0 }
 0xc79   :  { %v3875_v11 = vadd.f32 %v3003_v40, %v2573_v6  ;;  %v1569_v26 = vmul.f32 %v3889_v49, %v3530_v62 }
 0xc7a   :  { %v1556_v14 = vpop.f32.mrf.mxu0 }
 0xc7b   :  { %v3877_v50 = vadd.f32 %v2573_v6, %v1556_v14  ;;  %1603 = vrot.lane.b32.xlu1 %v3875_v11, %s3251_s19  ;;  %v1572_v60 = vmul.f32 %v3875_v11, %v3555_v7 }
 0xc7d   :  { %1601 = vrot.lane.b32.xlu0 %v3877_v50, %s3251_s19  ;;  %v1571_v58 = vmul.f32 %v3877_v50, %v3546_v5  ;;  %v1579_v30 = vmul.f32 %v3877_v50, %v3614_v45  ;;  %v1575_v45 = vmul.f32 %v3897_v41, %v3653_v59 }
 0xc7f   :  { %1599 = vrot.lane.b32.xlu1 %v3881_v34, %s3251_s19 }
 0xc81   :  { %1595 = vrot.lane.b32.xlu0 %v3885_v17, %s3251_s19 }
 0xc83   :  { %1597 = vrot.lane.b32.xlu1 %v3889_v49, %s3251_s19 }
 0xc85   :  { %1591 = vrot.lane.b32.xlu0 %v3893_v37, %s3251_s19 }
 0xc87   :  { %1593 = vrot.lane.b32.xlu1 %v3897_v41, %s3251_s19 }
 0xc8b   :  { %1589 = vrot.lane.b32.xlu1 %v3868_v8, %s3251_s19 }
 0xced   :  { %v1604_v18 = vpop.permute.xlu1 %1603 }
 0xcee   :  { %3004 = vmatprep.subr.msk.mxu1 %vm237_vm1, %v1604_v18 }
 0xcef   :  { %3005 = vmatpush3.xpose.msk.msra.mxu1 %vm237_vm1, %v1604_v18  ;;  %v1602_v21 = vpop.permute.xlu0 %1601 }
 0xcf0   :  { %3006 = vmatprep.subr.msk.mxu1 %vm237_vm1, %v1602_v21 }
 0xcf1   :  { %v1600_v23 = vpop.permute.xlu1 %1599 }
 0xcf3   :  { %3007 = vmatpush3.xpose.msk.msra.mxu1 %vm237_vm1, %v1602_v21  ;;  %v1596_v13 = vpop.permute.xlu0 %1595 }
 0xcf4   :  { %3008 = vmatprep.subr.msk.mxu1 %vm237_vm1, %v1600_v23 }
 0xcf5   :  { %v1598_v25 = vpop.permute.xlu1 %1597 }
 0xcf7   :  { %3009 = vmatpush3.xpose.msk.msra.mxu1 %vm237_vm1, %v1600_v23  ;;  %v1592_v28 = vpop.permute.xlu0 %1591 }
 0xcf8   :  { %3010 = vmatprep.subr.msk.mxu1 %vm237_vm1, %v1598_v25 }
 0xcf9   :  { %v1594_v2 = vpop.permute.xlu1 %1593 }
 0xcfb   :  { %3011 = vmatpush3.xpose.msk.msra.mxu1 %vm237_vm1, %v1598_v25 }
 0xcfc   :  { %3012 = vmatprep.subr.msk.mxu1 %vm237_vm1, %v1596_v13 }
 0xcfd   :  { %v1590_v16 = vpop.permute.xlu1 %1589 }
 0xcff   :  { %3013 = vmatpush3.xpose.msk.msra.mxu1 %vm237_vm1, %v1596_v13 }
 0xd00   :  { %3014 = vmatprep.subr.msk.mxu1 %vm237_vm1, %v1594_v2 }
 0xd03   :  { %3015 = vmatpush3.xpose.msk.msra.mxu1 %vm237_vm1, %v1594_v2 }
 0xd04   :  { %3016 = vmatprep.subr.msk.mxu1 %vm237_vm1, %v1592_v28 }
 0xd07   :  { %3017 = vmatpush3.xpose.msk.msra.mxu1 %vm237_vm1, %v1592_v28 }
 0xd08   :  { %3018 = vmatprep.subr.msk.mxu1 %vm237_vm1, %v1590_v16 }
 0xd0b   :  { %3019 = vmatpush3.xpose.msk.msra.mxu1 %vm237_vm1, %v1590_v16 }
 0xd0e   :  { %3021 = vmatmul.mubr.msk.f32.vlgmr.msra.gmra.mxu1 %vm237_vm1, %v1566_v33 }
 0xd0f   :  { %3023 = vmatprep.mubr.msk.f32.mxu1 %vm237_vm1, %v1567_v42 }
 0xd12   :  { %3024 = vmatmul.mubr.msk.f32.gmra.mxu1 %vm237_vm1, %v1568_v19 }
 0xd13   :  { %3026 = vmatprep.mubr.msk.f32.mxu1 %vm237_vm1, %v1569_v26 }
 0xd16   :  { %3027 = vmatmul.mubr.msk.f32.gmra.mxu1 %vm237_vm1, %v1570_v57 }
 0xd17   :  { %3029 = vmatprep.mubr.msk.f32.mxu1 %vm237_vm1, %v1571_v58 }
 0xd1a   :  { %3030 = vmatmul.mubr.msk.f32.gmra.mxu1 %vm237_vm1, %v1572_v60 }
 0xdce   :  { %v3022_v62 = vpop.f32.mrf.mxu1 }
 0xdcf   :  { %v1717_v44 = vadd.f32 %v3022_v62, %v3567_v10 }
 0xdd0   :  { %v1711_v24 = vpop.f32.mrf.mxu1 }
 0xdd1   :  { %v1712_v29 = vadd.f32 %v1711_v24, %v3572_v12  ;;  %v1753_v3 = vsel %vm584_vm2, %v1717_v44, -inf }
 0xdd2   :  { %1754 = vmax.xlane.f32.xlu1 %v1753_v3  ;;  %v3025_v48 = vpop.f32.mrf.mxu1 }
 0xdd3   :  { %v1750_v5 = vsel %vm584_vm2, %v1712_v29, -inf  ;;  %v1727_v7 = vadd.f32 %v3025_v48, %v3578_v15 }
 0xdd4   :  { %v1721_v43 = vpop.f32.mrf.mxu1  ;;  %1751 = vmax.xlane.f32.xlu0 %v1750_v5 }
 0xdd5   :  { %v1722_v39 = vadd.f32 %v1721_v43, %v3589_v22  ;;  %v1759_v56 = vsel %vm584_vm2, %v1727_v7, -inf }
 0xdd6   :  { %v3028_v55 = vpop.f32.mrf.mxu1 }
 0xdd7   :  { %v1756_v6 = vsel %vm584_vm2, %v1722_v39, -inf  ;;  %v1737_v12 = vadd.f32 %v3028_v55, %v3597_v27  ;;  %v1578_v27 = vmul.f32 %v3881_v34, %v3644_v53  ;;  %v1577_v53 = vmul.f32 %v3889_v49, %v3646_v54 }
 0xdd8   :  { %v1731_v31 = vpop.f32.mrf.mxu1  ;;  %1757 = vmax.xlane.f32.xlu0 %v1756_v6 }
 0xdd9   :  { %v1732_v10 = vadd.f32 %v1731_v31, %v3627_v35  ;;  %v1765_v1 = vsel %vm584_vm2, %v1737_v12, -inf  ;;  %v1580_v35 = vmul.f32 %v3875_v11, %v3606_v36  ;;  %v1574_v31 = vmul.f32 %v3893_v37, %v3661_v4 }
 0xdda   :  { %v3031_v0 = vpop.f32.mrf.mxu1  ;;  %v1573_v4 = vmul.f32 %v3868_v8, %v3659_v63 }
 0xddb   :  { %v1762_v61 = vsel %vm584_vm2, %v1732_v10, -inf  ;;  %v1747_v22 = vadd.f32 %v3031_v0, %v3604_v32  ;;  %v1576_v32 = vmul.f32 %v3885_v17, %v3618_v47 }
 0xddc   :  { %1763 = vmax.xlane.f32.xlu1 %v1762_v61  ;;  %1760 = vmax.xlane.f32.xlu0 %v1759_v56  ;;  %v1741_v9 = vpop.f32.mrf.mxu1 }
 0xddd   :  { %v1771_v15 = vsel %vm584_vm2, %v1747_v22, -inf  ;;  %v3969_v36 = vadd.f32 %v1741_v9, %v3635_v38 }
 0xddf   :  { %v1768_v40 = vsel %vm584_vm2, %v3969_v36, -inf }
 0xde0   :  { %1766 = vmax.xlane.f32.xlu0 %v1765_v1 }
 0xde4   :  { %1772 = vmax.xlane.f32.xlu0 %v1771_v15 }
 0xded   :  { %1860 = vrot.lane.b32.xlu1 %v1580_v35, %s3252_s22 }
 0xdf1   :  { %1856 = vrot.lane.b32.xlu1 %v1578_v27, %s3252_s22 }
 0xdfa   :  { %1858 = vrot.lane.b32.xlu0 %v1579_v30, %s3252_s22 }
 0xdfe   :  { %1852 = vrot.lane.b32.xlu0 %v1576_v32, %s3252_s22 }
 0xe15   :  { %1769 = vmax.xlane.f32.xlu1 %v1768_v40 }
 0xe26   :  { %1854 = vrot.lane.b32.xlu1 %v1577_v53, %s3252_s22 }
 0xe2a   :  { %1850 = vrot.lane.b32.xlu1 %v1575_v45, %s3252_s22 }
 0xe5b   :  { %v1755_v47 = vpop.xlane.xlu1 %1754 }
 0xe5c   :  { %v1775_v11 = vsub.f32 %v1717_v44, %v1755_v47 }
 0xe5d   :  { %v1752_v14 = vpop.xlane.xlu0 %1751 }
 0xe5e   :  { %v1784_v50 = vmul.f32 1.442695, %v1775_v11  ;;  %v1774_v38 = vsub.f32 %v1712_v29, %v1752_v14 }
 0xe60   :  { %3173 = vpow2.f32 %v1784_v50  ;;  %v1782_v34 = vmul.f32 1.442695, %v1774_v38 }
 0xe61   :  { %v1758_v17 = vpop.xlane.xlu0 %1757 }
 0xe62   :  { %3175 = vpow2.f32 %v1782_v34  ;;  %v1776_v18 = vsub.f32 %v1722_v39, %v1758_v17 }
 0xe64   :  { %v1786_v21 = vmul.f32 1.442695, %v1776_v18 }
 0xe65   :  { %v1764_v23 = vpop.xlane.xlu1 %1763  ;;  %v1761_v54 = vpop.xlane.xlu0 %1760 }
 0xe66   :  { %3177 = vpow2.f32 %v1786_v21  ;;  %v1778_v49 = vsub.f32 %v1732_v10, %v1764_v23  ;;  %v1777_v25 = vsub.f32 %v1727_v7, %v1761_v54 }
 0xe68   :  { %v1790_v13 = vmul.f32 1.442695, %v1778_v49  ;;  %v1788_v59 = vmul.f32 1.442695, %v1777_v25 }
 0xe69   :  { %v1861_v41 = vpop.permute.xlu1 %1860  ;;  %v1767_v2 = vpop.xlane.xlu0 %1766 }
 0xe6a   :  { %3179 = vpow2.f32 %v1790_v13  ;;  %v1779_v28 = vsub.f32 %v1737_v12, %v1767_v2  ;;  %3032 = vmatprep.subr.mxu0 %v1861_v41 }
 0xe6b   :  { %3181 = vpow2.f32 %v1788_v59  ;;  %3033 = vmatpush3.msra.mxu0 %v1861_v41 }
 0xe6c   :  { %v1792_v16 = vmul.f32 1.442695, %v1779_v28 }
 0xe6d   :  { %v3979_v33 = vpop.eup %3173  ;;  %v1773_v42 = vpop.xlane.xlu0 %1772 }
 0xe6e   :  { %3183 = vpow2.f32 %v1792_v16  ;;  %v1781_v19 = vsub.f32 %v1747_v22, %v1773_v42  ;;  %v1801_v26 = vsel %vm584_vm2, %v3979_v33, 0.0  ;;  %v1857_v24 = vpop.permute.xlu1 %1856 }
 0xe6f   :  { %v3176_v57 = vpop.eup %3175  ;;  %1802 = vadd.xlane.f32.xlu0 %v1801_v26  ;;  %v2610_v26 = vld [vmem:[%s4128_s8 + $0x30] sm:$0xff] }
 0xe70   :  { %v1796_v58 = vmul.f32 1.442695, %v1781_v19  ;;  %v1798_v60 = vsel %vm584_vm2, %v3176_v57, 0.0 }
 0xe71   :  { %v1859_v62 = vpop.permute.xlu0 %1858  ;;  %1799 = vadd.xlane.f32.xlu1 %v1798_v60 }
 0xe72   :  { %3185 = vpow2.f32 %v1796_v58  ;;  %3034 = vmatprep.subr.mxu0 %v1859_v62  ;;  %v2608_v58 = vld [vmem:[%s4128_s8 + $0x20] sm:$0xff] }
 0xe73   :  { %v3984_v44 = vpop.eup %3177  ;;  %3035 = vmatpush3.msra.mxu0 %v1859_v62 }
 0xe74   :  { %3036 = vmatprep.subr.mxu0 %v1857_v24  ;;  %v1804_v29 = vsel %vm584_vm2, %v3984_v44, 0.0 }
 0xe75   :  { %3037 = vmatpush3.msra.mxu0 %v1857_v24  ;;  %1805 = vadd.xlane.f32.xlu1 %v1804_v29  ;;  %v1853_v0 = vpop.permute.xlu0 %1852 }
 0xe77   :  { %v3988_v3 = vpop.eup %3179 }
 0xe78   :  { %v3990_v48 = vpop.eup %3181  ;;  %v1810_v5 = vsel %vm584_vm2, %v3988_v3, 0.0 }
 0xe79   :  { %v1807_v43 = vsel %vm584_vm2, %v3990_v48, 0.0  ;;  %1811 = vadd.xlane.f32.xlu1 %v1810_v5 }
 0xe7a   :  { %1808 = vadd.xlane.f32.xlu0 %v1807_v43 }
 0xe7b   :  { %v3996_v39 = vpop.eup %3183 }
 0xe7c   :  { %v1813_v55 = vsel %vm584_vm2, %v3996_v39, 0.0 }
 0xe7e   :  { %1814 = vadd.xlane.f32.xlu0 %v1813_v55 }
 0xe7f   :  { %v4000_v7 = vpop.eup %3185 }
 0xe80   :  { %v1819_v6 = vsel %vm584_vm2, %v4000_v7, 0.0 }
 0xe82   :  { %1820 = vadd.xlane.f32.xlu0 %v1819_v6 }
 0xe98   :  { %1848 = vrot.lane.b32.xlu0 %v1574_v31, %s3252_s22 }
 0xe9e   :  { %v1770_v10 = vpop.xlane.xlu1 %1769 }
 0xe9f   :  { %v1780_v12 = vsub.f32 %v3969_v36, %v1770_v10 }
 0xea1   :  { %v1794_v61 = vmul.f32 1.442695, %v1780_v12 }
 0xea2   :  { %v1855_v56 = vpop.permute.xlu1 %1854 }
 0xea3   :  { %3187 = vpow2.f32 %v1794_v61  ;;  %3038 = vmatprep.subr.mxu0 %v1855_v56 }
 0xea4   :  { %3039 = vmatpush3.msra.mxu0 %v1855_v56 }
 0xea5   :  { %3040 = vmatprep.subr.mxu0 %v1853_v0 }
 0xea6   :  { %3041 = vmatpush3.msra.mxu0 %v1853_v0  ;;  %v1851_v22 = vpop.permute.xlu1 %1850 }
 0xea7   :  { %3042 = vmatprep.subr.mxu0 %v1851_v22 }
 0xea8   :  { %3043 = vmatpush3.msra.mxu0 %v1851_v22  ;;  %v2622_v22 = vld [vmem:[%s4132_s12 + $0x30] sm:$0xff] }
 0xeb0   :  { %v3188_v1 = vpop.eup %3187 }
 0xeb1   :  { %v1816_v15 = vsel %vm584_vm2, %v3188_v1, 0.0 }
 0xeb2   :  { %1817 = vadd.xlane.f32.xlu1 %v1816_v15  ;;  %v2620_v15 = vld [vmem:[%s4132_s12 + $0x20] sm:$0xff] }
 0xec3   :  { %1846 = vrot.lane.b32.xlu1 %v1573_v4, %s3252_s22  ;;  %v2635_v4 = vld [vmem:[%s4134_s14 + $0x78] sm:$0xff] }
 0xef8   :  { %v1803_v35 = vpop.xlane.xlu0 %1802 }
 0xefa   :  { %v1800_v37 = vpop.xlane.xlu1 %1799 }
 0xefb   :  { %3189 = vrcp.f32 %v1800_v37  ;;  %v2634_v37 = vld [vmem:[%s4134_s14 + $0x70] sm:$0xff] }
 0xefc   :  { %3191 = vrcp.f32 %v1803_v35  ;;  %v2633_v35 = vld [vmem:[%s4134_s14 + $0x68] sm:$0xff] }
 0xefe   :  { %v1806_v53 = vpop.xlane.xlu1 %1805 }
 0xeff   :  { %3193 = vrcp.f32 %v1806_v53 }
 0xf02   :  { %v1812_v45 = vpop.xlane.xlu1 %1811 }
 0xf03   :  { %v1809_v27 = vpop.xlane.xlu0 %1808 }
 0xf04   :  { %3195 = vrcp.f32 %v1809_v27  ;;  %v2632_v27 = vld [vmem:[%s4134_s14 + $0x60] sm:$0xff] }
 0xf05   :  { %3197 = vrcp.f32 %v1812_v45 }
 0xf07   :  { %v1815_v30 = vpop.xlane.xlu0 %1814 }
 0xf08   :  { %v3190_v32 = vpop.eup %3189  ;;  %3199 = vrcp.f32 %v1815_v30 }
 0xf09   :  { %v1823_v9 = vmul.f32 %v3190_v32, %v3176_v57  ;;  %v3192_v8 = vpop.eup %3191  ;;  %v2609_v57 = vld [vmem:[%s4128_s8 + $0x28] sm:$0xff] }
 0xf0a   :  { %v1825_v14 = vmul.f32 %v3192_v8, %v3979_v33 }
 0xf0b   :  { %v1821_v36 = vpop.xlane.xlu0 %1820  ;;  %3048 = vmatprep.mubr.msk.f32.mxu0 %vm584_vm2, %v1823_v9 }
 0xf0c   :  { %3201 = vrcp.f32 %v1821_v36  ;;  %v3194_v47 = vpop.eup %3193 }
 0xf0d   :  { %v1827_v38 = vmul.f32 %v3194_v47, %v3984_v44 }
 0xf0f   :  { %v1849_v40 = vpop.permute.xlu0 %1848 }
 0xf10   :  { %3044 = vmatprep.subr.mxu0 %v1849_v40 }
 0xf11   :  { %3045 = vmatpush3.msra.mxu0 %v1849_v40  ;;  %v3196_v50 = vpop.eup %3195 }
 0xf12   :  { %v3198_v34 = vpop.eup %3197  ;;  %v1829_v17 = vmul.f32 %v3196_v50, %v3990_v48 }
 0xf13   :  { %v1831_v21 = vmul.f32 %v3198_v34, %v3988_v3 }
 0xf15   :  { %v3200_v18 = vpop.eup %3199 }
 0xf16   :  { %v1833_v54 = vmul.f32 %v3200_v18, %v3996_v39 }
 0xf19   :  { %v3202_v23 = vpop.eup %3201 }
 0xf1a   :  { %v1837_v13 = vmul.f32 %v3202_v23, %v4000_v7 }
 0xf3b   :  { %v1818_v63 = vpop.xlane.xlu1 %1817 }
 0xf3c   :  { %3203 = vrcp.f32 %v1818_v63 }
 0xf3f   :  { %v1847_v11 = vpop.permute.xlu1 %1846 }
 0xf40   :  { %3046 = vmatprep.subr.mxu0 %v1847_v11 }
 0xf41   :  { %3047 = vmatpush3.msra.mxu0 %v1847_v11 }
 0xf42   :  { %3049 = vmatmul.mubr.msk.f32.vlgmr.msra.gmra.mxu0 %vm584_vm2, %v1825_v14 }
 0xf43   :  { %3051 = vmatprep.mubr.msk.f32.mxu0 %vm584_vm2, %v1827_v38 }
 0xf46   :  { %3052 = vmatmul.mubr.msk.f32.gmra.mxu0 %vm584_vm2, %v1829_v17 }
 0xf47   :  { %3054 = vmatprep.mubr.msk.f32.mxu0 %vm584_vm2, %v1831_v21  ;;  %v2618_v21 = vld [vmem:[%s4130_s10 + $0x1] ss:$0 sm:$0xff] }
 0xf49   :  { %v3204_v49 = vpop.eup %3203 }
 0xf4a   :  { %3055 = vmatmul.mubr.msk.f32.gmra.mxu0 %vm584_vm2, %v1833_v54  ;;  %v1835_v25 = vmul.f32 %v3204_v49, %v3188_v1  ;;  %v2621_v1 = vld [vmem:[%s4132_s12 + $0x28] sm:$0xff]  ;;  %v2619_v54 = vld [vmem:[%s4131_s11 + $0x1] ss:$0 sm:$0xff] }
 0xf4c   :  { %3057 = vmatprep.mubr.msk.f32.mxu0 %vm584_vm2, %v1835_v25 }
 0xf4e   :  { %3058 = vmatmul.mubr.msk.f32.gmra.mxu0 %vm584_vm2, %v1837_v13 }
 0xf4f   :  { %3076 = vmatprep.mubr.msk.f32.mxu0 %vm584_vm2, %v3711_v46  ;;  %v2611_v46 = vld [vmem:[%s4128_s8 + $0x38] sm:$0xff] }
0x1002   :  { %v3050_v59 = vpop.f32.mrf.mxu0 }
0x1004   :  { %v1960_v41 = vpop.f32.mrf.mxu0 }
0x1006   :  { %v3053_v2 = vpop.f32.mrf.mxu0 }
0x1008   :  { %v1970_v28 = vpop.f32.mrf.mxu0 }
0x100a   :  { %v3056_v16 = vpop.f32.mrf.mxu0 }
0x100c   :  { %v1980_v33 = vpop.f32.mrf.mxu0 }
0x100e   :  { %v3059_v42 = vpop.f32.mrf.mxu0 }
0x100f   :  { %3060 = vmatprep.subr.mxu0 %v3059_v42 }
0x1010   :  { %v1990_v19 = vpop.f32.mrf.mxu0  ;;  %3061 = vmatpush3.msra.mxu0 %v3059_v42  ;;  %v2628_v42 = vld [vmem:[%s4134_s14 + $0x40] sm:$0xff] }
0x1011   :  { %3062 = vmatprep.subr.mxu0 %v1990_v19 }
0x1012   :  { %3063 = vmatpush3.msra.mxu0 %v1990_v19  ;;  %v2625_v19 = vld [vmem:[%s4133_s13 + $0x1] ss:$0 sm:$0xff] }
0x1013   :  { %3064 = vmatprep.subr.mxu0 %v3056_v16 }
0x1014   :  { %3065 = vmatpush3.msra.mxu0 %v3056_v16  ;;  %v2630_v16 = vld [vmem:[%s4134_s14 + $0x50] sm:$0xff] }
0x1015   :  { %3066 = vmatprep.subr.mxu0 %v1980_v33 }
0x1016   :  { %3067 = vmatpush3.msra.mxu0 %v1980_v33  ;;  %v2629_v33 = vld [vmem:[%s4134_s14 + $0x48] sm:$0xff] }
0x1017   :  { %3068 = vmatprep.subr.mxu0 %v3053_v2 }
0x1018   :  { %3069 = vmatpush3.msra.mxu0 %v3053_v2 }
0x1019   :  { %3070 = vmatprep.subr.mxu0 %v1970_v28 }
0x101a   :  { %3071 = vmatpush3.msra.mxu0 %v1970_v28  ;;  %v2631_v28 = vld [vmem:[%s4134_s14 + $0x58] sm:$0xff] }
0x101b   :  { %3072 = vmatprep.subr.mxu0 %v3050_v59 }
0x101c   :  { %3073 = vmatpush3.msra.mxu0 %v3050_v59 }
0x101d   :  { %3074 = vmatprep.subr.mxu0 %v1960_v41 }
0x101e   :  { %3075 = vmatpush3.msra.mxu0 %v1960_v41 }
0x101f   :  { %3077 = vmatmul.mubr.msk.f32.vlgmr.msra.gmra.mxu0 %vm584_vm2, %v3718_v52  ;;  %3079 = vmatprep.subr.mxu0 %v2611_v46  ;;  %v2613_v52 = vld [vmem:[%s4129_s9 + $0x1] ss:$0 sm:$0xff] }
0x1020   :  { %3080 = vmatpush3.msra.mxu0 %v2611_v46 }
0x1021   :  { %3081 = vmatprep.subr.mxu0 %v2610_v26 }
0x1022   :  { %3082 = vmatpush3.msra.mxu0 %v2610_v26 }
0x1023   :  { %3083 = vmatprep.subr.mxu0 %v2609_v57 }
0x1024   :  { %3084 = vmatpush3.msra.mxu0 %v2609_v57 }
0x1025   :  { %3085 = vmatprep.subr.mxu0 %v2608_v58 }
0x1026   :  { %3086 = vmatpush3.msra.mxu0 %v2608_v58 }
0x1027   :  { %3101 = vmatprep.subr.mxu0 %v2635_v4 }
0x10df   :  { %v3078_v60 = vpop.f32.mrf.mxu0 }
0x10e1   :  { %v2065_v62 = vpop.f32.mrf.mxu0 }
0x10e2   :  { %3087 = vmatprep.mubr.msk.f32.mxu0 %vm237_vm1, %v2065_v62 }
0x10e3   :  { %3088 = vmatmul.mubr.msk.f32.vlgmr.msra.gmra.mxu0 %vm237_vm1, %v3078_v60 }
0x10e4   :  { %3102 = vmatpush3.msra.mxu0 %v2635_v4 }
0x10e5   :  { %3103 = vmatprep.subr.mxu0 %v2634_v37 }
0x10e6   :  { %3104 = vmatpush3.msra.mxu0 %v2634_v37 }
0x10e7   :  { %3105 = vmatprep.subr.mxu0 %v2633_v35 }
0x10e8   :  { %3106 = vmatpush3.msra.mxu0 %v2633_v35 }
0x10e9   :  { %3107 = vmatprep.subr.mxu0 %v2632_v27 }
0x10ea   :  { %3108 = vmatpush3.msra.mxu0 %v2632_v27 }
0x10eb   :  { %3109 = vmatprep.subr.mxu0 %v2631_v28 }
0x10ec   :  { %3110 = vmatpush3.msra.mxu0 %v2631_v28 }
0x10ed   :  { %3111 = vmatprep.subr.mxu0 %v2630_v16 }
0x10ee   :  { %3112 = vmatpush3.msra.mxu0 %v2630_v16 }
0x10ef   :  { %3113 = vmatprep.subr.mxu0 %v2629_v33 }
0x10f0   :  { %3114 = vmatpush3.msra.mxu0 %v2629_v33 }
0x10f1   :  { %3115 = vmatprep.subr.mxu0 %v2628_v42 }
0x10f2   :  { %3116 = vmatpush3.msra.mxu0 %v2628_v42 }
0x11a3   :  { %v3089_v44 = vpop.f32.mrf.mxu0 }
0x11a4   :  { %v2165_v24 = vadd.f32 %v3089_v44, %v2613_v52 }
0x11a5   :  { %v2159_v29 = vpop.f32.mrf.mxu0 }
0x11a6   :  { %v2160_v3 = vadd.f32 %v2613_v52, %v2159_v29  ;;  %v2169_v48 = vadd.f32 %v2165_v24, %v3815_v51  ;;  %v2637_v52 = vld [vmem:[%s4135_s15 + $0x1] ss:$0 sm:$0xff] }
0x11a8   :  { %v2177_v5 = vsel %vm237_vm1, %v2169_v48, 0.0  ;;  %v2168_v43 = vadd.f32 %v2160_v3, %v3819_v20  ;;  %v2623_v20 = vld [vmem:[%s4132_s12 + $0x38] sm:$0xff] }
0x11a9   :  { %2178 = vadd.xlane.f32.xlu1 %v2177_v5  ;;  %3090 = vmatprep.subr.mxu1 %v2623_v20 }
0x11aa   :  { %v2174_v39 = vsel %vm237_vm1, %v2168_v43, 0.0  ;;  %3091 = vmatpush3.msra.mxu1 %v2623_v20 }
0x11ab   :  { %2175 = vadd.xlane.f32.xlu0 %v2174_v39  ;;  %3092 = vmatprep.subr.mxu1 %v2622_v22 }
0x11ac   :  { %3093 = vmatpush3.msra.mxu1 %v2622_v22 }
0x11ad   :  { %3094 = vmatprep.subr.mxu1 %v2621_v1 }
0x11ae   :  { %3095 = vmatpush3.msra.mxu1 %v2621_v1 }
0x11af   :  { %3096 = vmatprep.subr.mxu1 %v2620_v15 }
0x11b0   :  { %3097 = vmatpush3.msra.mxu1 %v2620_v15 }
0x1232   :  { %v2179_v55 = vpop.xlane.xlu1 %2178 }
0x1233   :  { %v2181_v7 = vmul.f32 0.03125, %v2179_v55 }
0x1234   :  { %v2176_v6 = vpop.xlane.xlu0 %2175 }
0x1235   :  { %v2180_v31 = vmul.f32 0.03125, %v2176_v6  ;;  %v2183_v10 = vsub.f32 %v2169_v48, %v2181_v7 }
0x1237   :  { %v2182_v12 = vsub.f32 %v2168_v43, %v2180_v31  ;;  %v2185_v0 = vmul.f32 %v2183_v10, %v2183_v10 }
0x1239   :  { %v2184_v61 = vmul.f32 %v2182_v12, %v2182_v12  ;;  %v2189_v51 = vsel %vm237_vm1, %v2185_v0, 0.0 }
0x123b   :  { %v2186_v56 = vsel %vm237_vm1, %v2184_v61, 0.0 }
0x123c   :  { %2187 = vadd.xlane.f32.xlu0 %v2186_v56 }
0x1240   :  { %2190 = vadd.xlane.f32.xlu0 %v2189_v51 }
0x12c5   :  { %v2188_v30 = vpop.xlane.xlu0 %2187 }
0x12c6   :  { %v2192_v32 = vmul.f32 0.03125, %v2188_v30 }
0x12c8   :  { %3205 = vrsqrt.f32 %v2192_v32  ;;  %vm2196_vm11 = vcmp.eq.f32.partialorder %v2192_v32, inf  ;;  %v2199_v45 = vand.u32 2147483648, %v2192_v32  ;;  %vm2198_vm12 = vcmp.eq.f32.partialorder %v2192_v32, 0.0 }
0x12c9   :  { %v2191_v9 = vpop.xlane.xlu0 %2190 }
0x12ca   :  { %v2193_v36 = vmul.f32 0.03125, %v2191_v9 }
0x12cc   :  { %3207 = vrsqrt.f32 %v2193_v36  ;;  %vm2203_vm13 = vcmp.eq.f32.partialorder %v2193_v36, inf  ;;  %v2206_v50 = vand.u32 2147483648, %v2193_v36  ;;  %vm2205_vm14 = vcmp.eq.f32.partialorder %v2193_v36, 0.0 }
0x12d5   :  { %v3206_v40 = vpop.eup %3205 }
0x12d6   :  { %v2195_v53 = vmul.f32 %v3206_v40, %v2192_v32 }
0x12d8   :  { %v2197_v63 = vsel %vm2196_vm11, %v2192_v32, %v2195_v53 }
0x12d9   :  { %v3208_v8 = vpop.eup %3207  ;;  %v2200_v47 = vsel %vm2198_vm12, %v2199_v45, %v2197_v63 }
0x12da   :  { %v2208_v11 = vadd.f32 1e-10, %v2200_v47  ;;  %v2202_v14 = vmul.f32 %v3208_v8, %v2193_v36  ;;  %v2642_v47 = vld [vmem:[%s4136_s16 + $0x1] ss:$0 sm:$0xff] }
0x12dc   :  { %3209 = vrcp.f32 %v2208_v11  ;;  %v2204_v38 = vsel %vm2203_vm13, %v2193_v36, %v2202_v14  ;;  %v2643_v14 = vld [vmem:[%s4137_s17 + $0x1] ss:$0 sm:$0xff] }
0x12dd   :  { %v2207_v34 = vsel %vm2205_vm14, %v2206_v50, %v2204_v38 }
0x12de   :  { %v2209_v17 = vadd.f32 1e-10, %v2207_v34 }
0x12e0   :  { %3211 = vrcp.f32 %v2209_v17 }
0x12e9   :  { %v3210_v18 = vpop.eup %3209 }
0x12ea   :  { %v2211_v23 = vmul.f32 %v3210_v18, %v2182_v12 }
0x12ec   :  { %v2220_v49 = vmul.f32 %v2618_v21, %v2211_v23 }
0x12ed   :  { %v3212_v25 = vpop.eup %3211 }
0x12ee   :  { %v2213_v13 = vmul.f32 %v3212_v25, %v2183_v10  ;;  %v2228_v59 = vadd.f32 %v2619_v54, %v2220_v49 }
0x12f0   :  { %v2221_v41 = vmul.f32 %v2618_v21, %v2213_v13  ;;  %3098 = vmatprep.mubr.msk.f32.mxu1 %vm237_vm1, %v2228_v59 }
0x12f2   :  { %v2229_v2 = vadd.f32 %v2619_v54, %v2221_v41 }
0x12f4   :  { %3099 = vmatmul.mubr.msk.f32.vlgmr.msra.gmra.mxu1 %vm237_vm1, %v2229_v2 }
0x13b4   :  { %v3100_v46 = vpop.f32.mrf.mxu1 }
0x13b5   :  { %v2321_v26 = vadd.f32 %v3100_v46, %v2625_v19 }
0x13b6   :  { %v2315_v57 = vpop.f32.mrf.mxu1 }
0x13b7   :  { %v2316_v58 = vadd.f32 %v2625_v19, %v2315_v57  ;;  %v2325_v62 = vmax.f32 %v2321_v26, 0.0 }
0x13b9   :  { %v2324_v60 = vmax.f32 %v2316_v58, 0.0 }
0x13bb   :  { %3117 = vmatprep.mubr.msk.f32.mxu0 %vm584_vm2, %v2324_v60 }
0x13bc   :  { %3118 = vmatmul.mubr.msk.f32.vlgmr.msra.gmra.mxu0 %vm584_vm2, %v2325_v62 }
0x147c   :  { %v3119_v44 = vpop.f32.mrf.mxu0 }
0x147d   :  { %v2421_v24 = vadd.f32 %v3119_v44, %v2637_v52 }
0x147e   :  { %v2415_v29 = vpop.f32.mrf.mxu0 }
0x147f   :  { %v2416_v3 = vadd.f32 %v2637_v52, %v2415_v29  ;;  %v2425_v48 = vadd.f32 %v2421_v24, %v2229_v2 }
0x1481   :  { %v2433_v5 = vsel %vm237_vm1, %v2425_v48, 0.0  ;;  %v2424_v43 = vadd.f32 %v2416_v3, %v2228_v59 }
0x1482   :  { %2434 = vadd.xlane.f32.xlu0 %v2433_v5 }
0x1483   :  { %v2430_v39 = vsel %vm237_vm1, %v2424_v43, 0.0 }
0x1484   :  { %2431 = vadd.xlane.f32.xlu1 %v2430_v39 }
0x150b   :  { %v2435_v55 = vpop.xlane.xlu0 %2434 }
0x150c   :  { %v2437_v7 = vmul.f32 0.03125, %v2435_v55 }
0x150d   :  { %v2432_v6 = vpop.xlane.xlu1 %2431 }
0x150e   :  { %v2439_v31 = vsub.f32 %v2425_v48, %v2437_v7  ;;  %v2436_v10 = vmul.f32 0.03125, %v2432_v6 }
0x1510   :  { %v2438_v12 = vsub.f32 %v2424_v43, %v2436_v10  ;;  %v2441_v61 = vmul.f32 %v2439_v31, %v2439_v31 }
0x1512   :  { %v2445_v56 = vsel %vm237_vm1, %v2441_v61, 0.0  ;;  %v2440_v0 = vmul.f32 %v2438_v12, %v2438_v12 }
0x1513   :  { %2446 = vadd.xlane.f32.xlu0 %v2445_v56 }
0x1514   :  { %v2442_v51 = vsel %vm237_vm1, %v2440_v0, 0.0 }
0x1515   :  { %2443 = vadd.xlane.f32.xlu1 %v2442_v51 }
0x159c   :  { %v2447_v20 = vpop.xlane.xlu0 %2446 }
0x159d   :  { %v2449_v22 = vmul.f32 0.03125, %v2447_v20 }
0x159e   :  { %v2444_v1 = vpop.xlane.xlu1 %2443 }
0x159f   :  { %3213 = vrsqrt.f32 %v2449_v22  ;;  %v2448_v15 = vmul.f32 0.03125, %v2444_v1  ;;  %vm2459_vm15 = vcmp.eq.f32.partialorder %v2449_v22, inf  ;;  %v2462_v35 = vand.u32 2147483648, %v2449_v22 }
0x15a0   :  { %vm2461_vm0 = vcmp.eq.f32.partialorder %v2449_v22, 0.0 }
0x15a1   :  { %3215 = vrsqrt.f32 %v2448_v15  ;;  %vm2452_vm2 = vcmp.eq.f32.partialorder %v2448_v15, inf  ;;  %v2455_v40 = vand.u32 2147483648, %v2448_v15  ;;  %vm2454_vm3 = vcmp.eq.f32.partialorder %v2448_v15, 0.0 }
0x15ac   :  { %v3214_v4 = vpop.eup %3213 }
0x15ad   :  { %v2458_v37 = vmul.f32 %v3214_v4, %v2449_v22 }
0x15ae   :  { %v3216_v27 = vpop.eup %3215 }
0x15af   :  { %v2460_v30 = vsel %vm2459_vm15, %v2449_v22, %v2458_v37  ;;  %v2451_v9 = vmul.f32 %v3216_v27, %v2448_v15 }
0x15b0   :  { %v2463_v32 = vsel %vm2461_vm0, %v2462_v35, %v2460_v30 }
0x15b1   :  { %v2465_v36 = vadd.f32 1e-10, %v2463_v32  ;;  %v2453_v53 = vsel %vm2452_vm2, %v2448_v15, %v2451_v9 }
0x15b2   :  { %v2456_v45 = vsel %vm2454_vm3, %v2455_v40, %v2453_v53 }
0x15b3   :  { %3217 = vrcp.f32 %v2465_v36  ;;  %v2464_v63 = vadd.f32 1e-10, %v2456_v45 }
0x15b5   :  { %3219 = vrcp.f32 %v2464_v63 }
0x15c0   :  { %v3218_v8 = vpop.eup %3217 }
0x15c1   :  { %v2469_v11 = vmul.f32 %v3218_v8, %v2439_v31 }
0x15c2   :  { %v3220_v50 = vpop.eup %3219 }
0x15c3   :  { %v2477_v38 = vmul.f32 %v2642_v47, %v2469_v11  ;;  %v2467_v34 = vmul.f32 %v3220_v50, %v2438_v12 }
0x15c5   :  { %v2485_v17 = vadd.f32 %v2643_v14, %v2477_v38  ;;  %v2476_v18 = vmul.f32 %v2642_v47, %v2467_v34 }
0x15c7   :  { %2487 = vst.msk [vmem:[#allocation2 + $0x8] sm:$0xff] %vm237_vm1, %v2485_v17  ;;  %v2484_v21 = vadd.f32 %v2643_v14, %v2476_v18 }
0x15c9   :  { %2486 = vst.msk [vmem:[#allocation2] sm:$0xff] %vm237_vm1, %v2484_v21 }
0x15ca   :  { %3240 = shalt.err (!%p3237_p4)
}
0x15cb   :  { %s3254_s16 = smov 128   ;;  %s3255_s17 = smov 8  }
0x15cc   :  { %2499 = dma.vmem_to_hbm [thread:$0]  %s2494_s20, 256, %s4138_s18, [#allocation3], %s3254_s16, %s3254_s16, %s3255_s17  }
0x15cd   :  { %3249 = dma.done.wait [#allocation3], 256  }
0x15ce   :  { %3250 = vsyncadd [#allocation3], 4294967040 }
0x15cf   :  { %2503 = vsyncpa [#allocation3], 1 }

</bundles_post_ra>
